<compile_context>
chip_gen: v7x
topology: tpu7x:2x2x1
jax: 0.10.0
libtpu: 0.0.40
codegen_flags: <defaults>
</compile_context>

<pallas_src>
import functools

import jax
import jax.numpy as jnp
from jax.experimental import pallas as pl
from jax.experimental.pallas import tpu as pltpu

DTYPE = jnp.bfloat16          # model dtype: bf16 MXU operands, f32 accumulation
_LN_EPS = 1e-5
_VMEM_LIMIT = 40 * 1024 * 1024  # fits v7x (64 MiB physical), trivial on v5e/v6e


def _cp(n_grid_axes):
    return pltpu.CompilerParams(
        dimension_semantics=("parallel",) * n_grid_axes,
        vmem_limit_bytes=_VMEM_LIMIT,
    )


def _choose_row_tile(m, target):
    """Row tile + padded row count.  For m > target we always tile (rows are
    padded up to a multiple of the tile) instead of falling back to one block."""
    if m <= target:
        return m, m
    tm = max(8, (target // 8) * 8)
    padded = ((m + tm - 1) // tm) * tm
    return tm, padded


def _choose_batch_block(bsz, target):
    """Largest divisor of bsz that is <= target (sequences per attention step)."""
    nb = max(1, min(bsz, target))
    while bsz % nb:
        nb -= 1
    return nb


def _pad_rows(x, padded_m):
    m = x.shape[0]
    if padded_m == m:
        return x
    return jnp.pad(x, ((0, padded_m - m), (0, 0)))


# -----------------------------------------------------------------------------
# Kernels
# -----------------------------------------------------------------------------


def _layernorm_f32(x, g_ref, b_ref):
    mean = jnp.mean(x, axis=-1, keepdims=True)
    cen = x - mean
    var = jnp.mean(cen * cen, axis=-1, keepdims=True)
    y = cen * jax.lax.rsqrt(var + _LN_EPS)
    return y * g_ref[...].astype(jnp.float32) + b_ref[...].astype(jnp.float32)


def _ln_linear_kernel(x_ref, g_ref, b_ref, w_ref, bias_ref, o_ref):
    """Fused LayerNorm + Linear: o = LN(x) @ W + b (single HBM pass over x)."""
    x = x_ref[...].astype(jnp.float32)
    h = _layernorm_f32(x, g_ref, b_ref)
    acc = jnp.dot(h.astype(w_ref.dtype), w_ref[...],
                  preferred_element_type=jnp.float32)
    acc = acc + bias_ref[...].astype(jnp.float32)
    o_ref[...] = acc.astype(o_ref.dtype)


def _ln_mlp_residual_kernel(x_ref, g_ref, b_ref, wfc_ref, bfc_ref,
                            wpj_ref, bpj_ref, o_ref):
    """Fused LayerNorm + c_fc + QuickGELU + c_proj + residual add."""
    x = x_ref[...].astype(jnp.float32)
    h = _layernorm_f32(x, g_ref, b_ref)
    a = jnp.dot(h.astype(wfc_ref.dtype), wfc_ref[...],
                preferred_element_type=jnp.float32)
    a = a + bfc_ref[...].astype(jnp.float32)
    # TODO(synk): on v6e/v7x run the sigmoid in bf16 to halve EUP occupancy;
    # kept f32 here because v5e's EUP has no bf16 path.
    a = a * jax.nn.sigmoid(1.702 * a)                      # QuickGELU (f32, EUP)
    y = jnp.dot(a.astype(wpj_ref.dtype), wpj_ref[...],
                preferred_element_type=jnp.float32)
    y = y + bpj_ref[...].astype(jnp.float32) + x           # residual
    o_ref[...] = y.astype(o_ref.dtype)


def _ln_attn_residual_kernel(x_ref, g1_ref, b1_ref, win_ref, bin_ref,
                             wo_ref, bo_ref, o_ref, qkv_sc, attn_sc, *,
                             n_heads, scale):
    """Fused LN1 + QKV proj + causal MHA + out_proj + residual for Nb sequences.

    QKV never leaves VMEM; per-head outputs are written into a lane-dense
    [Nb, S, D] scratch slab so out_proj is a single K=D matmul after the loop.
    """
    nb, s_len, d = x_ref.shape
    dh = d // n_heads

    # ---- LN1 + packed QKV projection (M = Nb*S rows, weight VMEM-resident) ----
    x = x_ref[...].astype(jnp.float32).reshape(nb * s_len, d)
    h = _layernorm_f32(x, g1_ref, b1_ref)
    qkv = jnp.dot(h.astype(win_ref.dtype), win_ref[...],
                  preferred_element_type=jnp.float32)
    qkv = qkv + bin_ref[...].astype(jnp.float32)
    qkv_sc[...] = qkv.astype(qkv_sc.dtype).reshape(nb, s_len, 3 * d)

    # ---- causal mask as a precomputed additive bias (f32, computed once) ----
    qi = jax.lax.broadcasted_iota(jnp.int32, (s_len, s_len), 0)
    ki = jax.lax.broadcasted_iota(jnp.int32, (s_len, s_len), 1)
    bias = jnp.where(ki <= qi, 0.0, -1e30).astype(jnp.float32)[None, :, :]

    # ---- per-head attention; each head sinks into the VMEM slab so the
    #      [S,S] score/prob temporaries die per iteration (no vreg spill chain).
    # TODO(synk): for real CLIP (S=77, Dh=64) pack 2 heads per iteration and pad
    # the key axis to 128 for fully lane-dense score tiles.
    for hd in range(n_heads):
        q = qkv_sc[:, :, hd * dh:(hd + 1) * dh] * scale        # scale folded into q
        k = qkv_sc[:, :, d + hd * dh:d + (hd + 1) * dh]
        v = qkv_sc[:, :, 2 * d + hd * dh:2 * d + (hd + 1) * dh]
        s = jnp.einsum("bqd,bkd->bqk", q, k,
                       preferred_element_type=jnp.float32) + bias
        m = jnp.max(s, axis=-1, keepdims=True)
        p = jnp.exp(s - m)                                      # f32 softmax
        # approx reciprocal (EUP slot): ~2^-12 rel err vs exact divide.
        p = p * pl.reciprocal(jnp.sum(p, axis=-1, keepdims=True), approx=True)
        o_h = jnp.einsum("bqk,bkd->bqd", p.astype(v.dtype), v,
                         preferred_element_type=jnp.float32)
        attn_sc[:, :, hd * dh:(hd + 1) * dh] = o_h.astype(attn_sc.dtype)

    # ---- single out_proj matmul over the concatenated slab + residual ----
    attn = attn_sc[...].reshape(nb * s_len, d)
    out = jnp.dot(attn, wo_ref[...], preferred_element_type=jnp.float32)
    out = out + bo_ref[...].astype(jnp.float32) + x
    o_ref[...] = out.astype(o_ref.dtype).reshape(nb, s_len, d)


# -----------------------------------------------------------------------------
# pallas_call wrappers
# -----------------------------------------------------------------------------


def ln_linear(x, gamma, beta, w, bias, *, block_rows=512):
    m, d = x.shape
    n = w.shape[1]
    tm, mp = _choose_row_tile(m, block_rows)
    xp = _pad_rows(x, mp)
    out = pl.pallas_call(
        _ln_linear_kernel,
        grid=(mp // tm,),
        in_specs=[
            pl.BlockSpec((tm, d), lambda i: (i, 0)),
            pl.BlockSpec((1, d), lambda i: (0, 0)),
            pl.BlockSpec((1, d), lambda i: (0, 0)),
            pl.BlockSpec((d, n), lambda i: (0, 0)),   # weight stays VMEM-resident
            pl.BlockSpec((1, n), lambda i: (0, 0)),
        ],
        out_specs=pl.BlockSpec((tm, n), lambda i: (i, 0)),
        out_shape=jax.ShapeDtypeStruct((mp, n), x.dtype),
        compiler_params=_cp(1),
    )(xp, gamma.reshape(1, d), beta.reshape(1, d), w, bias.reshape(1, n))
    return out[:m] if mp != m else out


def ln_mlp_residual(x, gamma, beta, w_fc, b_fc, w_proj, b_proj, *, block_rows=512):
    m, d = x.shape
    dff = w_fc.shape[1]
    tm, mp = _choose_row_tile(m, block_rows)
    xp = _pad_rows(x, mp)
    out = pl.pallas_call(
        _ln_mlp_residual_kernel,
        grid=(mp // tm,),
        in_specs=[
            pl.BlockSpec((tm, d), lambda i: (i, 0)),
            pl.BlockSpec((1, d), lambda i: (0, 0)),
            pl.BlockSpec((1, d), lambda i: (0, 0)),
            pl.BlockSpec((d, dff), lambda i: (0, 0)),
            pl.BlockSpec((1, dff), lambda i: (0, 0)),
            pl.BlockSpec((dff, d), lambda i: (0, 0)),
            pl.BlockSpec((1, d), lambda i: (0, 0)),
        ],
        out_specs=pl.BlockSpec((tm, d), lambda i: (i, 0)),
        out_shape=jax.ShapeDtypeStruct((mp, d), x.dtype),
        input_output_aliases={0: 0},            # residual output reuses x's buffer
        compiler_params=_cp(1),
    )(xp, gamma.reshape(1, d), beta.reshape(1, d),
      w_fc, b_fc.reshape(1, dff), w_proj, b_proj.reshape(1, d))
    return out[:m] if mp != m else out


def ln_attn_residual(x, g1, b1, w_in, b_in, w_out, b_out, *, n_heads, batch_block=8):
    bsz, seq, d = x.shape
    nb = _choose_batch_block(bsz, batch_block)
    dh = d // n_heads
    scale = 1.0 / float(dh) ** 0.5
    kern = functools.partial(_ln_attn_residual_kernel, n_heads=n_heads, scale=scale)
    return pl.pallas_call(
        kern,
        grid=(bsz // nb,),
        in_specs=[
            pl.BlockSpec((nb, seq, d), lambda i: (i, 0, 0)),
            pl.BlockSpec((1, d), lambda i: (0, 0)),
            pl.BlockSpec((1, d), lambda i: (0, 0)),
            pl.BlockSpec((d, 3 * d), lambda i: (0, 0)),   # VMEM-resident weights
            pl.BlockSpec((1, 3 * d), lambda i: (0, 0)),
            pl.BlockSpec((d, d), lambda i: (0, 0)),
            pl.BlockSpec((1, d), lambda i: (0, 0)),
        ],
        out_specs=pl.BlockSpec((nb, seq, d), lambda i: (i, 0, 0)),
        out_shape=jax.ShapeDtypeStruct((bsz, seq, d), x.dtype),
        scratch_shapes=[
            pltpu.VMEM((nb, seq, 3 * d), x.dtype),   # packed QKV (never hits HBM)
            pltpu.VMEM((nb, seq, d), x.dtype),       # concatenated head outputs
        ],
        input_output_aliases={0: 0},                 # residual output reuses x's buffer
        compiler_params=_cp(1),
    )(x, g1.reshape(1, d), b1.reshape(1, d),
      w_in, b_in.reshape(1, 3 * d), w_out, b_out.reshape(1, d))


# -----------------------------------------------------------------------------
# Transformer / TextEncoder forward
# -----------------------------------------------------------------------------


def residual_attention_block(x, p, *, n_heads, block_rows, batch_block):
    bsz, seq, d = x.shape
    # LN1 + QKV proj + causal MHA + out_proj + residual (one fused kernel)
    x = ln_attn_residual(x, p["ln1_g"], p["ln1_b"], p["in_proj_w"], p["in_proj_b"],
                         p["out_proj_w"], p["out_proj_b"],
                         n_heads=n_heads, batch_block=batch_block)
    # LN2 + MLP (QuickGELU) + residual (one fused kernel)
    y = ln_mlp_residual(x.reshape(bsz * seq, d), p["ln2_g"], p["ln2_b"],
                        p["c_fc_w"], p["c_fc_b"], p["c_proj_w"], p["c_proj_b"],
                        block_rows=block_rows)
    return y.reshape(bsz, seq, d)


def text_encoder_forward(tokenized_prompts, params, *, n_heads,
                         block_rows=512, batch_block=8):
    bsz, seq = tokenized_prompts.shape
    d = params["token_embedding"].shape[1]

    # token embedding (gather) + positional embedding          [B, S, D]
    x = jnp.take(params["token_embedding"], tokenized_prompts, axis=0).astype(DTYPE)
    x = x + params["positional_embedding"].astype(DTYPE)[None, :, :]

    # (PyTorch permutes to (S, B, D) purely for nn.MultiheadAttention's layout;
    #  we stay batch-first — semantics are identical.)
    for layer_params in params["layers"]:
        x = residual_attention_block(x, layer_params, n_heads=n_heads,
                                     block_rows=block_rows, batch_block=batch_block)

    # ln_final is per-position and only the EOT rows feed the projection, so
    # gather first, then one fused LN + text-projection kernel.
    eot_idx = jnp.argmax(tokenized_prompts, axis=-1)            # [B]
    x_eot = x[jnp.arange(bsz), eot_idx]                         # [B, D]
    proj_dim = params["text_projection"].shape[1]
    zero_bias = jnp.zeros((1, proj_dim), DTYPE)                 # projection has no bias
    return ln_linear(x_eot, params["ln_final_g"], params["ln_final_b"],
                     params["text_projection"], zero_bias, block_rows=block_rows)


# -----------------------------------------------------------------------------
# Deterministic parameter init (synthetic CLIP text tower)
# -----------------------------------------------------------------------------


def init_params(key, *, vocab, seq, d_model, n_layers, proj_dim):
    ks = jax.random.split(key, 4 + n_layers)

    def nrm(k, shape, scale=0.02):
        return (scale * jax.random.normal(k, shape)).astype(DTYPE)

    params = {
        "token_embedding": nrm(ks[0], (vocab, d_model)),
        "positional_embedding": nrm(ks[1], (seq, d_model), 0.01),
        "ln_final_g": jnp.ones((d_model,), DTYPE),
        "ln_final_b": jnp.zeros((d_model,), DTYPE),
        "text_projection": nrm(ks[2], (d_model, proj_dim)),
        "layers": [],
    }
    for li in range(n_layers):
        lk = jax.random.split(ks[4 + li], 4)
        params["layers"].append(
            {
                "ln1_g": jnp.ones((d_model,), DTYPE),
                "ln1_b": jnp.zeros((d_model,), DTYPE),
                "in_proj_w": nrm(lk[0], (d_model, 3 * d_model)),
                "in_proj_b": jnp.zeros((3 * d_model,), DTYPE),
                "out_proj_w": nrm(lk[1], (d_model, d_model)),
                "out_proj_b": jnp.zeros((d_model,), DTYPE),
                "ln2_g": jnp.ones((d_model,), DTYPE),
                "ln2_b": jnp.zeros((d_model,), DTYPE),
                "c_fc_w": nrm(lk[2], (d_model, 4 * d_model)),
                "c_fc_b": jnp.zeros((4 * d_model,), DTYPE),
                "c_proj_w": nrm(lk[3], (4 * d_model, d_model)),
                "c_proj_b": jnp.zeros((d_model,), DTYPE),
            }
        )
    return params


# -----------------------------------------------------------------------------


if __name__ == "__main__":
    VOCAB, SEQ, D_MODEL, N_HEADS, N_LAYERS, PROJ = 64, 8, 64, 4, 2, 64
    BATCH = 4
    BLOCK_ROWS = 16    # small demo tiles so the row grid actually pipelines (M=32 -> 2 steps)
    BATCH_BLOCK = 2    # 2 sequences per attention step -> 2 grid steps at B=4

    key = jax.random.PRNGKey(0)
    k_param, k_tok = jax.random.split(key)

    params = init_params(
        k_param, vocab=VOCAB, seq=SEQ, d_model=D_MODEL, n_layers=N_LAYERS, proj_dim=PROJ
    )

    # deterministic "prompts": random token ids with the EOT (= max id) token
    # placed at a per-sample position so tokenized_prompts.argmax(-1) is meaningful
    tokens = jax.random.randint(k_tok, (BATCH, SEQ), 1, VOCAB - 1).astype(jnp.int32)
    eot_pos = jnp.array([SEQ - 2, SEQ - 1, SEQ - 3, SEQ - 1], dtype=jnp.int32)
    tokens = tokens.at[jnp.arange(BATCH), eot_pos].set(VOCAB - 1)

    fwd = jax.jit(functools.partial(text_encoder_forward, n_heads=N_HEADS,
                                    block_rows=BLOCK_ROWS, batch_block=BATCH_BLOCK))
    out = jax.block_until_ready(fwd(tokens, params))

    assert out.shape == (BATCH, PROJ) and out.dtype == DTYPE
    assert bool(jnp.all(jnp.isfinite(out.astype(jnp.float32))))
    print("KERNEL_OK")
</pallas_src>

<mosaic_0001>
module attributes {stable_mosaic.version = 11 : i64} {
  func.func @_ln_attn_residual_kernel(%arg0: i32, %arg1: memref<2x8x64xbf16, #tpu.memory_space<vmem>>, %arg2: memref<1x64xbf16, #tpu.memory_space<vmem>>, %arg3: memref<1x64xbf16, #tpu.memory_space<vmem>>, %arg4: memref<64x192xbf16, #tpu.memory_space<vmem>>, %arg5: memref<1x192xbf16, #tpu.memory_space<vmem>>, %arg6: memref<64x64xbf16, #tpu.memory_space<vmem>>, %arg7: memref<1x64xbf16, #tpu.memory_space<vmem>>, %arg8: memref<2x8x64xbf16, #tpu.memory_space<vmem>>, %arg9: memref<2x8x192xbf16, #tpu.memory_space<vmem>>, %arg10: memref<2x8x64xbf16, #tpu.memory_space<vmem>>) attributes {dimension_semantics = [#tpu.dimension_semantics<parallel>], iteration_bounds = array<i64: 2>, scalar_prefetch = 0 : i64, scratch_operands = 2 : i64, tpu.core_type = #tpu.core_type<tc>, window_params = [{transform_indices = @transform_0, window_bounds = array<i64: 2, 8, 64>}, {pipeline_mode = #tpu.pipeline_mode<synchronous>, transform_indices = @transform_1, window_bounds = array<i64: 1, 64>}, {pipeline_mode = #tpu.pipeline_mode<synchronous>, transform_indices = @transform_2, window_bounds = array<i64: 1, 64>}, {pipeline_mode = #tpu.pipeline_mode<synchronous>, transform_indices = @transform_3, window_bounds = array<i64: 64, 192>}, {pipeline_mode = #tpu.pipeline_mode<synchronous>, transform_indices = @transform_4, window_bounds = array<i64: 1, 192>}, {pipeline_mode = #tpu.pipeline_mode<synchronous>, transform_indices = @transform_5, window_bounds = array<i64: 64, 64>}, {pipeline_mode = #tpu.pipeline_mode<synchronous>, transform_indices = @transform_6, window_bounds = array<i64: 1, 64>}, {transform_indices = @transform_7, window_bounds = array<i64: 2, 8, 64>}]} {
    %c0 = arith.constant 0 : index
    %c0_0 = arith.constant 0 : index
    %c0_1 = arith.constant 0 : index
    %0 = vector.load %arg1[%c0, %c0_0, %c0_1] : memref<2x8x64xbf16, #tpu.memory_space<vmem>>, vector<2x8x64xbf16>
    %1 = arith.extf %0 : vector<2x8x64xbf16> to vector<2x8x64xf32>
    %2 = vector.shape_cast %1 : vector<2x8x64xf32> to vector<16x64xf32>
    %cst = arith.constant dense<0.000000e+00> : vector<16xf32>
    %3 = vector.multi_reduction <add>, %2, %cst [1] : vector<16x64xf32> to vector<16xf32>
    %4 = vector.shape_cast %3 : vector<16xf32> to vector<16x1xf32>
    %cst_2 = arith.constant 6.400000e+01 : f32
    %5 = vector.broadcast %cst_2 : f32 to vector<16x1xf32>
    %6 = arith.divf %4, %5 : vector<16x1xf32>
    %7 = vector.broadcast %6 : vector<16x1xf32> to vector<16x64xf32>
    %8 = arith.subf %2, %7 : vector<16x64xf32>
    %9 = arith.mulf %8, %8 : vector<16x64xf32>
    %cst_3 = arith.constant dense<0.000000e+00> : vector<16xf32>
    %10 = vector.multi_reduction <add>, %9, %cst_3 [1] : vector<16x64xf32> to vector<16xf32>
    %11 = vector.shape_cast %10 : vector<16xf32> to vector<16x1xf32>
    %cst_4 = arith.constant 6.400000e+01 : f32
    %12 = vector.broadcast %cst_4 : f32 to vector<16x1xf32>
    %13 = arith.divf %11, %12 : vector<16x1xf32>
    %cst_5 = arith.constant 9.99999974E-6 : f32
    %14 = vector.broadcast %cst_5 : f32 to vector<16x1xf32>
    %15 = arith.addf %13, %14 : vector<16x1xf32>
    %16 = math.rsqrt %15 : vector<16x1xf32>
    %17 = vector.broadcast %16 : vector<16x1xf32> to vector<16x64xf32>
    %18 = arith.mulf %8, %17 : vector<16x64xf32>
    %c0_6 = arith.constant 0 : index
    %c0_7 = arith.constant 0 : index
    %19 = vector.load %arg2[%c0_6, %c0_7] : memref<1x64xbf16, #tpu.memory_space<vmem>>, vector<1x64xbf16>
    %20 = arith.extf %19 : vector<1x64xbf16> to vector<1x64xf32>
    %21 = vector.broadcast %20 : vector<1x64xf32> to vector<16x64xf32>
    %22 = arith.mulf %18, %21 : vector<16x64xf32>
    %c0_8 = arith.constant 0 : index
    %c0_9 = arith.constant 0 : index
    %23 = vector.load %arg3[%c0_8, %c0_9] : memref<1x64xbf16, #tpu.memory_space<vmem>>, vector<1x64xbf16>
    %24 = arith.extf %23 : vector<1x64xbf16> to vector<1x64xf32>
    %25 = vector.broadcast %24 : vector<1x64xf32> to vector<16x64xf32>
    %26 = arith.addf %22, %25 : vector<16x64xf32>
    %27 = arith.truncf %26 : vector<16x64xf32> to vector<16x64xbf16>
    %c0_10 = arith.constant 0 : index
    %c0_11 = arith.constant 0 : index
    %28 = vector.load %arg4[%c0_10, %c0_11] : memref<64x192xbf16, #tpu.memory_space<vmem>>, vector<64x192xbf16>
    %cst_12 = arith.constant dense<0.000000e+00> : vector<16x192xf32>
    %29 = tpu.matmul %27, %28, %cst_12 {dimension_numbers = #tpu.dot_dimension_numbers<[1], [0], [0], [1], [0, 0, 1, 1], [], []>} : vector<16x64xbf16>, vector<64x192xbf16>, vector<16x192xf32> -> vector<16x192xf32>
    %c0_13 = arith.constant 0 : index
    %c0_14 = arith.constant 0 : index
    %30 = vector.load %arg5[%c0_13, %c0_14] : memref<1x192xbf16, #tpu.memory_space<vmem>>, vector<1x192xbf16>
    %31 = arith.extf %30 : vector<1x192xbf16> to vector<1x192xf32>
    %32 = vector.broadcast %31 : vector<1x192xf32> to vector<16x192xf32>
    %33 = arith.addf %29, %32 : vector<16x192xf32>
    %34 = arith.truncf %33 : vector<16x192xf32> to vector<16x192xbf16>
    %35 = vector.shape_cast %34 : vector<16x192xbf16> to vector<2x8x192xbf16>
    %c0_15 = arith.constant 0 : index
    %c0_16 = arith.constant 0 : index
    %c0_17 = arith.constant 0 : index
    %36 = vector.load %arg9[%c0_15, %c0_16, %c0_17] : memref<2x8x192xbf16, #tpu.memory_space<vmem>>, vector<2x8x192xbf16>
    tpu.vector_store %arg9[%c0_15, %c0_16, %c0_17], %35 {strides = array<i32>} : memref<2x8x192xbf16, #tpu.memory_space<vmem>>, vector<2x8x192xbf16>,
    %37 = tpu.iota {dimensions = array<i32: 0>} : vector<8x8xi32>
    %38 = tpu.iota {dimensions = array<i32: 1>} : vector<8x8xi32>
    %39 = arith.cmpi sle, %38, %37 : vector<8x8xi32>
    %cst_18 = arith.constant 0.000000e+00 : f32
    %cst_19 = arith.constant -1.000000e+30 : f32
    %40 = vector.broadcast %cst_18 : f32 to vector<8x8xf32>
    %41 = vector.broadcast %cst_19 : f32 to vector<8x8xf32>
    %42 = arith.select %39, %40, %41 : vector<8x8xi1>, vector<8x8xf32>
    %43 = vector.shape_cast %42 : vector<8x8xf32> to vector<1x8x8xf32>
    %c0_20 = arith.constant 0 : index
    %c0_21 = arith.constant 0 : index
    %c0_22 = arith.constant 0 : index
    %44 = vector.load %arg9[%c0_20, %c0_21, %c0_22] : memref<2x8x192xbf16, #tpu.memory_space<vmem>>, vector<2x8x16xbf16>
    %cst_23 = arith.constant 2.500000e-01 : bf16
    %45 = vector.broadcast %cst_23 : bf16 to vector<2x8x16xbf16>
    %46 = arith.mulf %44, %45 : vector<2x8x16xbf16>
    %c0_24 = arith.constant 0 : index
    %c0_25 = arith.constant 0 : index
    %c64 = arith.constant 64 : index
    %47 = vector.load %arg9[%c0_24, %c0_25, %c64] : memref<2x8x192xbf16, #tpu.memory_space<vmem>>, vector<2x8x16xbf16>
    %c0_26 = arith.constant 0 : index
    %c0_27 = arith.constant 0 : index
    %c128 = arith.constant 128 : index
    %48 = vector.load %arg9[%c0_26, %c0_27, %c128] : memref<2x8x192xbf16, #tpu.memory_space<vmem>>, vector<2x8x16xbf16>
    "tpu.trace_start"() <{level = 10 : i32, message = "bqd,bkd->bqk"}> : () -> ()
    %cst_28 = arith.constant dense<0.000000e+00> : vector<2x8x8xf32>
    %49 = tpu.matmul %46, %47, %cst_28 {dimension_numbers = #tpu.dot_dimension_numbers<[2], [2], [1], [1], [0, 0, 0, 1, 1, 1], [0], [0]>} : vector<2x8x16xbf16>, vector<2x8x16xbf16>, vector<2x8x8xf32> -> vector<2x8x8xf32>
    "tpu.trace_stop"() : () -> ()
    %50 = vector.broadcast %43 : vector<1x8x8xf32> to vector<2x8x8xf32>
    %51 = arith.addf %49, %50 : vector<2x8x8xf32>
    %cst_29 = arith.constant dense<0xFF800000> : vector<2x8xf32>
    %52 = vector.multi_reduction <maximumf>, %51, %cst_29 [2] : vector<2x8x8xf32> to vector<2x8xf32>
    %53 = vector.shape_cast %52 : vector<2x8xf32> to vector<2x8x1xf32>
    %54 = vector.broadcast %53 : vector<2x8x1xf32> to vector<2x8x8xf32>
    %55 = arith.subf %51, %54 : vector<2x8x8xf32>
    %56 = math.exp %55 : vector<2x8x8xf32>
    %cst_30 = arith.constant dense<0.000000e+00> : vector<2x8xf32>
    %57 = vector.multi_reduction <add>, %56, %cst_30 [2] : vector<2x8x8xf32> to vector<2x8xf32>
    %58 = vector.shape_cast %57 : vector<2x8xf32> to vector<2x8x1xf32>
    %59 = tpu.reciprocal %58 {approx = true} : vector<2x8x1xf32> -> vector<2x8x1xf32>
    %60 = vector.broadcast %59 : vector<2x8x1xf32> to vector<2x8x8xf32>
    %61 = arith.mulf %56, %60 : vector<2x8x8xf32>
    %62 = arith.truncf %61 : vector<2x8x8xf32> to vector<2x8x8xbf16>
    "tpu.trace_start"() <{level = 10 : i32, message = "bqk,bkd->bqd"}> : () -> ()
    %cst_31 = arith.constant dense<0.000000e+00> : vector<2x8x16xf32>
    %63 = tpu.matmul %62, %48, %cst_31 {dimension_numbers = #tpu.dot_dimension_numbers<[2], [1], [1], [2], [0, 0, 0, 1, 1, 2], [0], [0]>} : vector<2x8x8xbf16>, vector<2x8x16xbf16>, vector<2x8x16xf32> -> vector<2x8x16xf32>
    "tpu.trace_stop"() : () -> ()
    %64 = arith.truncf %63 : vector<2x8x16xf32> to vector<2x8x16xbf16>
    %c0_32 = arith.constant 0 : index
    %c0_33 = arith.constant 0 : index
    %c0_34 = arith.constant 0 : index
    %65 = vector.load %arg10[%c0_32, %c0_33, %c0_34] : memref<2x8x64xbf16, #tpu.memory_space<vmem>>, vector<2x8x16xbf16>
    tpu.vector_store %arg10[%c0_32, %c0_33, %c0_34], %64 {strides = array<i32>} : memref<2x8x64xbf16, #tpu.memory_space<vmem>>, vector<2x8x16xbf16>,
    %c0_35 = arith.constant 0 : index
    %c0_36 = arith.constant 0 : index
    %c16 = arith.constant 16 : index
    %66 = vector.load %arg9[%c0_35, %c0_36, %c16] : memref<2x8x192xbf16, #tpu.memory_space<vmem>>, vector<2x8x16xbf16>
    %cst_37 = arith.constant 2.500000e-01 : bf16
    %67 = vector.broadcast %cst_37 : bf16 to vector<2x8x16xbf16>
    %68 = arith.mulf %66, %67 : vector<2x8x16xbf16>
    %c0_38 = arith.constant 0 : index
    %c0_39 = arith.constant 0 : index
    %c80 = arith.constant 80 : index
    %69 = vector.load %arg9[%c0_38, %c0_39, %c80] : memref<2x8x192xbf16, #tpu.memory_space<vmem>>, vector<2x8x16xbf16>
    %c0_40 = arith.constant 0 : index
    %c0_41 = arith.constant 0 : index
    %c144 = arith.constant 144 : index
    %70 = vector.load %arg9[%c0_40, %c0_41, %c144] : memref<2x8x192xbf16, #tpu.memory_space<vmem>>, vector<2x8x16xbf16>
    "tpu.trace_start"() <{level = 10 : i32, message = "bqd,bkd->bqk"}> : () -> ()
    %cst_42 = arith.constant dense<0.000000e+00> : vector<2x8x8xf32>
    %71 = tpu.matmul %68, %69, %cst_42 {dimension_numbers = #tpu.dot_dimension_numbers<[2], [2], [1], [1], [0, 0, 0, 1, 1, 1], [0], [0]>} : vector<2x8x16xbf16>, vector<2x8x16xbf16>, vector<2x8x8xf32> -> vector<2x8x8xf32>
    "tpu.trace_stop"() : () -> ()
    %72 = vector.broadcast %43 : vector<1x8x8xf32> to vector<2x8x8xf32>
    %73 = arith.addf %71, %72 : vector<2x8x8xf32>
    %cst_43 = arith.constant dense<0xFF800000> : vector<2x8xf32>
    %74 = vector.multi_reduction <maximumf>, %73, %cst_43 [2] : vector<2x8x8xf32> to vector<2x8xf32>
    %75 = vector.shape_cast %74 : vector<2x8xf32> to vector<2x8x1xf32>
    %76 = vector.broadcast %75 : vector<2x8x1xf32> to vector<2x8x8xf32>
    %77 = arith.subf %73, %76 : vector<2x8x8xf32>
    %78 = math.exp %77 : vector<2x8x8xf32>
    %cst_44 = arith.constant dense<0.000000e+00> : vector<2x8xf32>
    %79 = vector.multi_reduction <add>, %78, %cst_44 [2] : vector<2x8x8xf32> to vector<2x8xf32>
    %80 = vector.shape_cast %79 : vector<2x8xf32> to vector<2x8x1xf32>
    %81 = tpu.reciprocal %80 {approx = true} : vector<2x8x1xf32> -> vector<2x8x1xf32>
    %82 = vector.broadcast %81 : vector<2x8x1xf32> to vector<2x8x8xf32>
    %83 = arith.mulf %78, %82 : vector<2x8x8xf32>
    %84 = arith.truncf %83 : vector<2x8x8xf32> to vector<2x8x8xbf16>
    "tpu.trace_start"() <{level = 10 : i32, message = "bqk,bkd->bqd"}> : () -> ()
    %cst_45 = arith.constant dense<0.000000e+00> : vector<2x8x16xf32>
    %85 = tpu.matmul %84, %70, %cst_45 {dimension_numbers = #tpu.dot_dimension_numbers<[2], [1], [1], [2], [0, 0, 0, 1, 1, 2], [0], [0]>} : vector<2x8x8xbf16>, vector<2x8x16xbf16>, vector<2x8x16xf32> -> vector<2x8x16xf32>
    "tpu.trace_stop"() : () -> ()
    %86 = arith.truncf %85 : vector<2x8x16xf32> to vector<2x8x16xbf16>
    %c0_46 = arith.constant 0 : index
    %c0_47 = arith.constant 0 : index
    %c16_48 = arith.constant 16 : index
    %87 = vector.load %arg10[%c0_46, %c0_47, %c16_48] : memref<2x8x64xbf16, #tpu.memory_space<vmem>>, vector<2x8x16xbf16>
    tpu.vector_store %arg10[%c0_46, %c0_47, %c16_48], %86 {strides = array<i32>} : memref<2x8x64xbf16, #tpu.memory_space<vmem>>, vector<2x8x16xbf16>,
    %c0_49 = arith.constant 0 : index
    %c0_50 = arith.constant 0 : index
    %c32 = arith.constant 32 : index
    %88 = vector.load %arg9[%c0_49, %c0_50, %c32] : memref<2x8x192xbf16, #tpu.memory_space<vmem>>, vector<2x8x16xbf16>
    %cst_51 = arith.constant 2.500000e-01 : bf16
    %89 = vector.broadcast %cst_51 : bf16 to vector<2x8x16xbf16>
    %90 = arith.mulf %88, %89 : vector<2x8x16xbf16>
    %c0_52 = arith.constant 0 : index
    %c0_53 = arith.constant 0 : index
    %c96 = arith.constant 96 : index
    %91 = vector.load %arg9[%c0_52, %c0_53, %c96] : memref<2x8x192xbf16, #tpu.memory_space<vmem>>, vector<2x8x16xbf16>
    %c0_54 = arith.constant 0 : index
    %c0_55 = arith.constant 0 : index
    %c160 = arith.constant 160 : index
    %92 = vector.load %arg9[%c0_54, %c0_55, %c160] : memref<2x8x192xbf16, #tpu.memory_space<vmem>>, vector<2x8x16xbf16>
    "tpu.trace_start"() <{level = 10 : i32, message = "bqd,bkd->bqk"}> : () -> ()
    %cst_56 = arith.constant dense<0.000000e+00> : vector<2x8x8xf32>
    %93 = tpu.matmul %90, %91, %cst_56 {dimension_numbers = #tpu.dot_dimension_numbers<[2], [2], [1], [1], [0, 0, 0, 1, 1, 1], [0], [0]>} : vector<2x8x16xbf16>, vector<2x8x16xbf16>, vector<2x8x8xf32> -> vector<2x8x8xf32>
    "tpu.trace_stop"() : () -> ()
    %94 = vector.broadcast %43 : vector<1x8x8xf32> to vector<2x8x8xf32>
    %95 = arith.addf %93, %94 : vector<2x8x8xf32>
    %cst_57 = arith.constant dense<0xFF800000> : vector<2x8xf32>
    %96 = vector.multi_reduction <maximumf>, %95, %cst_57 [2] : vector<2x8x8xf32> to vector<2x8xf32>
    %97 = vector.shape_cast %96 : vector<2x8xf32> to vector<2x8x1xf32>
    %98 = vector.broadcast %97 : vector<2x8x1xf32> to vector<2x8x8xf32>
    %99 = arith.subf %95, %98 : vector<2x8x8xf32>
    %100 = math.exp %99 : vector<2x8x8xf32>
    %cst_58 = arith.constant dense<0.000000e+00> : vector<2x8xf32>
    %101 = vector.multi_reduction <add>, %100, %cst_58 [2] : vector<2x8x8xf32> to vector<2x8xf32>
    %102 = vector.shape_cast %101 : vector<2x8xf32> to vector<2x8x1xf32>
    %103 = tpu.reciprocal %102 {approx = true} : vector<2x8x1xf32> -> vector<2x8x1xf32>
    %104 = vector.broadcast %103 : vector<2x8x1xf32> to vector<2x8x8xf32>
    %105 = arith.mulf %100, %104 : vector<2x8x8xf32>
    %106 = arith.truncf %105 : vector<2x8x8xf32> to vector<2x8x8xbf16>
    "tpu.trace_start"() <{level = 10 : i32, message = "bqk,bkd->bqd"}> : () -> ()
    %cst_59 = arith.constant dense<0.000000e+00> : vector<2x8x16xf32>
    %107 = tpu.matmul %106, %92, %cst_59 {dimension_numbers = #tpu.dot_dimension_numbers<[2], [1], [1], [2], [0, 0, 0, 1, 1, 2], [0], [0]>} : vector<2x8x8xbf16>, vector<2x8x16xbf16>, vector<2x8x16xf32> -> vector<2x8x16xf32>
    "tpu.trace_stop"() : () -> ()
    %108 = arith.truncf %107 : vector<2x8x16xf32> to vector<2x8x16xbf16>
    %c0_60 = arith.constant 0 : index
    %c0_61 = arith.constant 0 : index
    %c32_62 = arith.constant 32 : index
    %109 = vector.load %arg10[%c0_60, %c0_61, %c32_62] : memref<2x8x64xbf16, #tpu.memory_space<vmem>>, vector<2x8x16xbf16>
    tpu.vector_store %arg10[%c0_60, %c0_61, %c32_62], %108 {strides = array<i32>} : memref<2x8x64xbf16, #tpu.memory_space<vmem>>, vector<2x8x16xbf16>,
    %c0_63 = arith.constant 0 : index
    %c0_64 = arith.constant 0 : index
    %c48 = arith.constant 48 : index
    %110 = vector.load %arg9[%c0_63, %c0_64, %c48] : memref<2x8x192xbf16, #tpu.memory_space<vmem>>, vector<2x8x16xbf16>
    %cst_65 = arith.constant 2.500000e-01 : bf16
    %111 = vector.broadcast %cst_65 : bf16 to vector<2x8x16xbf16>
    %112 = arith.mulf %110, %111 : vector<2x8x16xbf16>
    %c0_66 = arith.constant 0 : index
    %c0_67 = arith.constant 0 : index
    %c112 = arith.constant 112 : index
    %113 = vector.load %arg9[%c0_66, %c0_67, %c112] : memref<2x8x192xbf16, #tpu.memory_space<vmem>>, vector<2x8x16xbf16>
    %c0_68 = arith.constant 0 : index
    %c0_69 = arith.constant 0 : index
    %c176 = arith.constant 176 : index
    %114 = vector.load %arg9[%c0_68, %c0_69, %c176] : memref<2x8x192xbf16, #tpu.memory_space<vmem>>, vector<2x8x16xbf16>
    "tpu.trace_start"() <{level = 10 : i32, message = "bqd,bkd->bqk"}> : () -> ()
    %cst_70 = arith.constant dense<0.000000e+00> : vector<2x8x8xf32>
    %115 = tpu.matmul %112, %113, %cst_70 {dimension_numbers = #tpu.dot_dimension_numbers<[2], [2], [1], [1], [0, 0, 0, 1, 1, 1], [0], [0]>} : vector<2x8x16xbf16>, vector<2x8x16xbf16>, vector<2x8x8xf32> -> vector<2x8x8xf32>
    "tpu.trace_stop"() : () -> ()
    %116 = vector.broadcast %43 : vector<1x8x8xf32> to vector<2x8x8xf32>
    %117 = arith.addf %115, %116 : vector<2x8x8xf32>
    %cst_71 = arith.constant dense<0xFF800000> : vector<2x8xf32>
    %118 = vector.multi_reduction <maximumf>, %117, %cst_71 [2] : vector<2x8x8xf32> to vector<2x8xf32>
    %119 = vector.shape_cast %118 : vector<2x8xf32> to vector<2x8x1xf32>
    %120 = vector.broadcast %119 : vector<2x8x1xf32> to vector<2x8x8xf32>
    %121 = arith.subf %117, %120 : vector<2x8x8xf32>
    %122 = math.exp %121 : vector<2x8x8xf32>
    %cst_72 = arith.constant dense<0.000000e+00> : vector<2x8xf32>
    %123 = vector.multi_reduction <add>, %122, %cst_72 [2] : vector<2x8x8xf32> to vector<2x8xf32>
    %124 = vector.shape_cast %123 : vector<2x8xf32> to vector<2x8x1xf32>
    %125 = tpu.reciprocal %124 {approx = true} : vector<2x8x1xf32> -> vector<2x8x1xf32>
    %126 = vector.broadcast %125 : vector<2x8x1xf32> to vector<2x8x8xf32>
    %127 = arith.mulf %122, %126 : vector<2x8x8xf32>
    %128 = arith.truncf %127 : vector<2x8x8xf32> to vector<2x8x8xbf16>
    "tpu.trace_start"() <{level = 10 : i32, message = "bqk,bkd->bqd"}> : () -> ()
    %cst_73 = arith.constant dense<0.000000e+00> : vector<2x8x16xf32>
    %129 = tpu.matmul %128, %114, %cst_73 {dimension_numbers = #tpu.dot_dimension_numbers<[2], [1], [1], [2], [0, 0, 0, 1, 1, 2], [0], [0]>} : vector<2x8x8xbf16>, vector<2x8x16xbf16>, vector<2x8x16xf32> -> vector<2x8x16xf32>
    "tpu.trace_stop"() : () -> ()
    %130 = arith.truncf %129 : vector<2x8x16xf32> to vector<2x8x16xbf16>
    %c0_74 = arith.constant 0 : index
    %c0_75 = arith.constant 0 : index
    %c48_76 = arith.constant 48 : index
    %131 = vector.load %arg10[%c0_74, %c0_75, %c48_76] : memref<2x8x64xbf16, #tpu.memory_space<vmem>>, vector<2x8x16xbf16>
    tpu.vector_store %arg10[%c0_74, %c0_75, %c48_76], %130 {strides = array<i32>} : memref<2x8x64xbf16, #tpu.memory_space<vmem>>, vector<2x8x16xbf16>,
    %c0_77 = arith.constant 0 : index
    %c0_78 = arith.constant 0 : index
    %c0_79 = arith.constant 0 : index
    %132 = vector.load %arg10[%c0_77, %c0_78, %c0_79] : memref<2x8x64xbf16, #tpu.memory_space<vmem>>, vector<2x8x64xbf16>
    %133 = vector.shape_cast %132 : vector<2x8x64xbf16> to vector<16x64xbf16>
    %c0_80 = arith.constant 0 : index
    %c0_81 = arith.constant 0 : index
    %134 = vector.load %arg6[%c0_80, %c0_81] : memref<64x64xbf16, #tpu.memory_space<vmem>>, vector<64x64xbf16>
    %cst_82 = arith.constant dense<0.000000e+00> : vector<16x64xf32>
    %135 = tpu.matmul %133, %134, %cst_82 {dimension_numbers = #tpu.dot_dimension_numbers<[1], [0], [0], [1], [0, 0, 1, 1], [], []>} : vector<16x64xbf16>, vector<64x64xbf16>, vector<16x64xf32> -> vector<16x64xf32>
    %c0_83 = arith.constant 0 : index
    %c0_84 = arith.constant 0 : index
    %136 = vector.load %arg7[%c0_83, %c0_84] : memref<1x64xbf16, #tpu.memory_space<vmem>>, vector<1x64xbf16>
    %137 = arith.extf %136 : vector<1x64xbf16> to vector<1x64xf32>
    %138 = vector.broadcast %137 : vector<1x64xf32> to vector<16x64xf32>
    %139 = arith.addf %135, %138 : vector<16x64xf32>
    %140 = arith.addf %139, %2 : vector<16x64xf32>
    %141 = arith.truncf %140 : vector<16x64xf32> to vector<16x64xbf16>
    %142 = vector.shape_cast %141 : vector<16x64xbf16> to vector<2x8x64xbf16>
    %c0_85 = arith.constant 0 : index
    %c0_86 = arith.constant 0 : index
    %c0_87 = arith.constant 0 : index
    %143 = vector.load %arg8[%c0_85, %c0_86, %c0_87] : memref<2x8x64xbf16, #tpu.memory_space<vmem>>, vector<2x8x64xbf16>
    tpu.vector_store %arg8[%c0_85, %c0_86, %c0_87], %142 {strides = array<i32>} : memref<2x8x64xbf16, #tpu.memory_space<vmem>>, vector<2x8x64xbf16>,
    return
  }
  func.func @transform_0(%arg0: i32) -> (i32, i32, i32) {
    %c0_i32 = arith.constant 0 : i32
    %c0_i32_0 = arith.constant 0 : i32
    %c0_i32_1 = arith.constant 0 : i32
    return %arg0, %c0_i32, %c0_i32_0 : i32, i32, i32
  }
  func.func @transform_1(%arg0: i32) -> (i32, i32) {
    %c0_i32 = arith.constant 0 : i32
    %c0_i32_0 = arith.constant 0 : i32
    %c0_i32_1 = arith.constant 0 : i32
    return %c0_i32, %c0_i32_0 : i32, i32
  }
  func.func @transform_2(%arg0: i32) -> (i32, i32) {
    %c0_i32 = arith.constant 0 : i32
    %c0_i32_0 = arith.constant 0 : i32
    %c0_i32_1 = arith.constant 0 : i32
    return %c0_i32, %c0_i32_0 : i32, i32
  }
  func.func @transform_3(%arg0: i32) -> (i32, i32) {
    %c0_i32 = arith.constant 0 : i32
    %c0_i32_0 = arith.constant 0 : i32
    %c0_i32_1 = arith.constant 0 : i32
    return %c0_i32, %c0_i32_0 : i32, i32
  }
  func.func @transform_4(%arg0: i32) -> (i32, i32) {
    %c0_i32 = arith.constant 0 : i32
    %c0_i32_0 = arith.constant 0 : i32
    %c0_i32_1 = arith.constant 0 : i32
    return %c0_i32, %c0_i32_0 : i32, i32
  }
  func.func @transform_5(%arg0: i32) -> (i32, i32) {
    %c0_i32 = arith.constant 0 : i32
    %c0_i32_0 = arith.constant 0 : i32
    %c0_i32_1 = arith.constant 0 : i32
    return %c0_i32, %c0_i32_0 : i32, i32
  }
  func.func @transform_6(%arg0: i32) -> (i32, i32) {
    %c0_i32 = arith.constant 0 : i32
    %c0_i32_0 = arith.constant 0 : i32
    %c0_i32_1 = arith.constant 0 : i32
    return %c0_i32, %c0_i32_0 : i32, i32
  }
  func.func @transform_7(%arg0: i32) -> (i32, i32, i32) {
    %c0_i32 = arith.constant 0 : i32
    %c0_i32_0 = arith.constant 0 : i32
    %c0_i32_1 = arith.constant 0 : i32
    return %arg0, %c0_i32, %c0_i32_0 : i32, i32, i32
  }
}

module attributes {stable_mosaic.version = 11 : i64} {
  func.func @_ln_mlp_residual_kernel(%arg0: i32, %arg1: memref<16x64xbf16, #tpu.memory_space<vmem>>, %arg2: memref<1x64xbf16, #tpu.memory_space<vmem>>, %arg3: memref<1x64xbf16, #tpu.memory_space<vmem>>, %arg4: memref<64x256xbf16, #tpu.memory_space<vmem>>, %arg5: memref<1x256xbf16, #tpu.memory_space<vmem>>, %arg6: memref<256x64xbf16, #tpu.memory_space<vmem>>, %arg7: memref<1x64xbf16, #tpu.memory_space<vmem>>, %arg8: memref<16x64xbf16, #tpu.memory_space<vmem>>) attributes {dimension_semantics = [#tpu.dimension_semantics<parallel>], iteration_bounds = array<i64: 2>, scalar_prefetch = 0 : i64, scratch_operands = 0 : i64, tpu.core_type = #tpu.core_type<tc>, window_params = [{transform_indices = @transform_0, window_bounds = array<i64: 16, 64>}, {pipeline_mode = #tpu.pipeline_mode<synchronous>, transform_indices = @transform_1, window_bounds = array<i64: 1, 64>}, {pipeline_mode = #tpu.pipeline_mode<synchronous>, transform_indices = @transform_2, window_bounds = array<i64: 1, 64>}, {pipeline_mode = #tpu.pipeline_mode<synchronous>, transform_indices = @transform_3, window_bounds = array<i64: 64, 256>}, {pipeline_mode = #tpu.pipeline_mode<synchronous>, transform_indices = @transform_4, window_bounds = array<i64: 1, 256>}, {pipeline_mode = #tpu.pipeline_mode<synchronous>, transform_indices = @transform_5, window_bounds = array<i64: 256, 64>}, {pipeline_mode = #tpu.pipeline_mode<synchronous>, transform_indices = @transform_6, window_bounds = array<i64: 1, 64>}, {transform_indices = @transform_7, window_bounds = array<i64: 16, 64>}]} {
    %c0 = arith.constant 0 : index
    %c0_0 = arith.constant 0 : index
    %0 = vector.load %arg1[%c0, %c0_0] : memref<16x64xbf16, #tpu.memory_space<vmem>>, vector<16x64xbf16>
    %1 = arith.extf %0 : vector<16x64xbf16> to vector<16x64xf32>
    %cst = arith.constant dense<0.000000e+00> : vector<16xf32>
    %2 = vector.multi_reduction <add>, %1, %cst [1] : vector<16x64xf32> to vector<16xf32>
    %3 = vector.shape_cast %2 : vector<16xf32> to vector<16x1xf32>
    %cst_1 = arith.constant 6.400000e+01 : f32
    %4 = vector.broadcast %cst_1 : f32 to vector<16x1xf32>
    %5 = arith.divf %3, %4 : vector<16x1xf32>
    %6 = vector.broadcast %5 : vector<16x1xf32> to vector<16x64xf32>
    %7 = arith.subf %1, %6 : vector<16x64xf32>
    %8 = arith.mulf %7, %7 : vector<16x64xf32>
    %cst_2 = arith.constant dense<0.000000e+00> : vector<16xf32>
    %9 = vector.multi_reduction <add>, %8, %cst_2 [1] : vector<16x64xf32> to vector<16xf32>
    %10 = vector.shape_cast %9 : vector<16xf32> to vector<16x1xf32>
    %cst_3 = arith.constant 6.400000e+01 : f32
    %11 = vector.broadcast %cst_3 : f32 to vector<16x1xf32>
    %12 = arith.divf %10, %11 : vector<16x1xf32>
    %cst_4 = arith.constant 9.99999974E-6 : f32
    %13 = vector.broadcast %cst_4 : f32 to vector<16x1xf32>
    %14 = arith.addf %12, %13 : vector<16x1xf32>
    %15 = math.rsqrt %14 : vector<16x1xf32>
    %16 = vector.broadcast %15 : vector<16x1xf32> to vector<16x64xf32>
    %17 = arith.mulf %7, %16 : vector<16x64xf32>
    %c0_5 = arith.constant 0 : index
    %c0_6 = arith.constant 0 : index
    %18 = vector.load %arg2[%c0_5, %c0_6] : memref<1x64xbf16, #tpu.memory_space<vmem>>, vector<1x64xbf16>
    %19 = arith.extf %18 : vector<1x64xbf16> to vector<1x64xf32>
    %20 = vector.broadcast %19 : vector<1x64xf32> to vector<16x64xf32>
    %21 = arith.mulf %17, %20 : vector<16x64xf32>
    %c0_7 = arith.constant 0 : index
    %c0_8 = arith.constant 0 : index
    %22 = vector.load %arg3[%c0_7, %c0_8] : memref<1x64xbf16, #tpu.memory_space<vmem>>, vector<1x64xbf16>
    %23 = arith.extf %22 : vector<1x64xbf16> to vector<1x64xf32>
    %24 = vector.broadcast %23 : vector<1x64xf32> to vector<16x64xf32>
    %25 = arith.addf %21, %24 : vector<16x64xf32>
    %26 = arith.truncf %25 : vector<16x64xf32> to vector<16x64xbf16>
    %c0_9 = arith.constant 0 : index
    %c0_10 = arith.constant 0 : index
    %27 = vector.load %arg4[%c0_9, %c0_10] : memref<64x256xbf16, #tpu.memory_space<vmem>>, vector<64x256xbf16>
    %cst_11 = arith.constant dense<0.000000e+00> : vector<16x256xf32>
    %28 = tpu.matmul %26, %27, %cst_11 {dimension_numbers = #tpu.dot_dimension_numbers<[1], [0], [0], [1], [0, 0, 1, 1], [], []>} : vector<16x64xbf16>, vector<64x256xbf16>, vector<16x256xf32> -> vector<16x256xf32>
    %c0_12 = arith.constant 0 : index
    %c0_13 = arith.constant 0 : index
    %29 = vector.load %arg5[%c0_12, %c0_13] : memref<1x256xbf16, #tpu.memory_space<vmem>>, vector<1x256xbf16>
    %30 = arith.extf %29 : vector<1x256xbf16> to vector<1x256xf32>
    %31 = vector.broadcast %30 : vector<1x256xf32> to vector<16x256xf32>
    %32 = arith.addf %28, %31 : vector<16x256xf32>
    %cst_14 = arith.constant 1.702000e+00 : f32
    %33 = vector.broadcast %cst_14 : f32 to vector<16x256xf32>
    %34 = arith.mulf %33, %32 : vector<16x256xf32>
    %35 = arith.negf %34 : vector<16x256xf32>
    %36 = math.exp %35 : vector<16x256xf32>
    %cst_15 = arith.constant 1.000000e+00 : f32
    %37 = vector.broadcast %cst_15 : f32 to vector<16x256xf32>
    %38 = arith.addf %37, %36 : vector<16x256xf32>
    %39 = arith.divf %37, %38 : vector<16x256xf32>
    %40 = arith.mulf %32, %39 : vector<16x256xf32>
    %41 = arith.truncf %40 : vector<16x256xf32> to vector<16x256xbf16>
    %c0_16 = arith.constant 0 : index
    %c0_17 = arith.constant 0 : index
    %42 = vector.load %arg6[%c0_16, %c0_17] : memref<256x64xbf16, #tpu.memory_space<vmem>>, vector<256x64xbf16>
    %cst_18 = arith.constant dense<0.000000e+00> : vector<16x64xf32>
    %43 = tpu.matmul %41, %42, %cst_18 {dimension_numbers = #tpu.dot_dimension_numbers<[1], [0], [0], [1], [0, 0, 1, 1], [], []>} : vector<16x256xbf16>, vector<256x64xbf16>, vector<16x64xf32> -> vector<16x64xf32>
    %c0_19 = arith.constant 0 : index
    %c0_20 = arith.constant 0 : index
    %44 = vector.load %arg7[%c0_19, %c0_20] : memref<1x64xbf16, #tpu.memory_space<vmem>>, vector<1x64xbf16>
    %45 = arith.extf %44 : vector<1x64xbf16> to vector<1x64xf32>
    %46 = vector.broadcast %45 : vector<1x64xf32> to vector<16x64xf32>
    %47 = arith.addf %43, %46 : vector<16x64xf32>
    %48 = arith.addf %47, %1 : vector<16x64xf32>
    %49 = arith.truncf %48 : vector<16x64xf32> to vector<16x64xbf16>
    %c0_21 = arith.constant 0 : index
    %c0_22 = arith.constant 0 : index
    %50 = vector.load %arg8[%c0_21, %c0_22] : memref<16x64xbf16, #tpu.memory_space<vmem>>, vector<16x64xbf16>
    tpu.vector_store %arg8[%c0_21, %c0_22], %49 {strides = array<i32>} : memref<16x64xbf16, #tpu.memory_space<vmem>>, vector<16x64xbf16>,
    return
  }
  func.func @transform_0(%arg0: i32) -> (i32, i32) {
    %c0_i32 = arith.constant 0 : i32
    %c0_i32_0 = arith.constant 0 : i32
    return %arg0, %c0_i32 : i32, i32
  }
  func.func @transform_1(%arg0: i32) -> (i32, i32) {
    %c0_i32 = arith.constant 0 : i32
    %c0_i32_0 = arith.constant 0 : i32
    %c0_i32_1 = arith.constant 0 : i32
    return %c0_i32, %c0_i32_0 : i32, i32
  }
  func.func @transform_2(%arg0: i32) -> (i32, i32) {
    %c0_i32 = arith.constant 0 : i32
    %c0_i32_0 = arith.constant 0 : i32
    %c0_i32_1 = arith.constant 0 : i32
    return %c0_i32, %c0_i32_0 : i32, i32
  }
  func.func @transform_3(%arg0: i32) -> (i32, i32) {
    %c0_i32 = arith.constant 0 : i32
    %c0_i32_0 = arith.constant 0 : i32
    %c0_i32_1 = arith.constant 0 : i32
    return %c0_i32, %c0_i32_0 : i32, i32
  }
  func.func @transform_4(%arg0: i32) -> (i32, i32) {
    %c0_i32 = arith.constant 0 : i32
    %c0_i32_0 = arith.constant 0 : i32
    %c0_i32_1 = arith.constant 0 : i32
    return %c0_i32, %c0_i32_0 : i32, i32
  }
  func.func @transform_5(%arg0: i32) -> (i32, i32) {
    %c0_i32 = arith.constant 0 : i32
    %c0_i32_0 = arith.constant 0 : i32
    %c0_i32_1 = arith.constant 0 : i32
    return %c0_i32, %c0_i32_0 : i32, i32
  }
  func.func @transform_6(%arg0: i32) -> (i32, i32) {
    %c0_i32 = arith.constant 0 : i32
    %c0_i32_0 = arith.constant 0 : i32
    %c0_i32_1 = arith.constant 0 : i32
    return %c0_i32, %c0_i32_0 : i32, i32
  }
  func.func @transform_7(%arg0: i32) -> (i32, i32) {
    %c0_i32 = arith.constant 0 : i32
    %c0_i32_0 = arith.constant 0 : i32
    return %arg0, %c0_i32 : i32, i32
  }
}

module attributes {stable_mosaic.version = 11 : i64} {
  func.func @_ln_linear_kernel(%arg0: i32, %arg1: memref<4x64xbf16, #tpu.memory_space<vmem>>, %arg2: memref<1x64xbf16, #tpu.memory_space<vmem>>, %arg3: memref<1x64xbf16, #tpu.memory_space<vmem>>, %arg4: memref<64x64xbf16, #tpu.memory_space<vmem>>, %arg5: memref<1x64xbf16, #tpu.memory_space<vmem>>, %arg6: memref<4x64xbf16, #tpu.memory_space<vmem>>) attributes {dimension_semantics = [#tpu.dimension_semantics<parallel>], iteration_bounds = array<i64: 1>, scalar_prefetch = 0 : i64, scratch_operands = 0 : i64, tpu.core_type = #tpu.core_type<tc>, window_params = [{transform_indices = @transform_0, window_bounds = array<i64: 4, 64>}, {pipeline_mode = #tpu.pipeline_mode<synchronous>, transform_indices = @transform_1, window_bounds = array<i64: 1, 64>}, {pipeline_mode = #tpu.pipeline_mode<synchronous>, transform_indices = @transform_2, window_bounds = array<i64: 1, 64>}, {pipeline_mode = #tpu.pipeline_mode<synchronous>, transform_indices = @transform_3, window_bounds = array<i64: 64, 64>}, {pipeline_mode = #tpu.pipeline_mode<synchronous>, transform_indices = @transform_4, window_bounds = array<i64: 1, 64>}, {transform_indices = @transform_5, window_bounds = array<i64: 4, 64>}]} {
    %c0 = arith.constant 0 : index
    %c0_0 = arith.constant 0 : index
    %0 = vector.load %arg1[%c0, %c0_0] : memref<4x64xbf16, #tpu.memory_space<vmem>>, vector<4x64xbf16>
    %1 = arith.extf %0 : vector<4x64xbf16> to vector<4x64xf32>
    %cst = arith.constant dense<0.000000e+00> : vector<4xf32>
    %2 = vector.multi_reduction <add>, %1, %cst [1] : vector<4x64xf32> to vector<4xf32>
    %3 = vector.shape_cast %2 : vector<4xf32> to vector<4x1xf32>
    %cst_1 = arith.constant 6.400000e+01 : f32
    %4 = vector.broadcast %cst_1 : f32 to vector<4x1xf32>
    %5 = arith.divf %3, %4 : vector<4x1xf32>
    %6 = vector.broadcast %5 : vector<4x1xf32> to vector<4x64xf32>
    %7 = arith.subf %1, %6 : vector<4x64xf32>
    %8 = arith.mulf %7, %7 : vector<4x64xf32>
    %cst_2 = arith.constant dense<0.000000e+00> : vector<4xf32>
    %9 = vector.multi_reduction <add>, %8, %cst_2 [1] : vector<4x64xf32> to vector<4xf32>
    %10 = vector.shape_cast %9 : vector<4xf32> to vector<4x1xf32>
    %cst_3 = arith.constant 6.400000e+01 : f32
    %11 = vector.broadcast %cst_3 : f32 to vector<4x1xf32>
    %12 = arith.divf %10, %11 : vector<4x1xf32>
    %cst_4 = arith.constant 9.99999974E-6 : f32
    %13 = vector.broadcast %cst_4 : f32 to vector<4x1xf32>
    %14 = arith.addf %12, %13 : vector<4x1xf32>
    %15 = math.rsqrt %14 : vector<4x1xf32>
    %16 = vector.broadcast %15 : vector<4x1xf32> to vector<4x64xf32>
    %17 = arith.mulf %7, %16 : vector<4x64xf32>
    %c0_5 = arith.constant 0 : index
    %c0_6 = arith.constant 0 : index
    %18 = vector.load %arg2[%c0_5, %c0_6] : memref<1x64xbf16, #tpu.memory_space<vmem>>, vector<1x64xbf16>
    %19 = arith.extf %18 : vector<1x64xbf16> to vector<1x64xf32>
    %20 = vector.broadcast %19 : vector<1x64xf32> to vector<4x64xf32>
    %21 = arith.mulf %17, %20 : vector<4x64xf32>
    %c0_7 = arith.constant 0 : index
    %c0_8 = arith.constant 0 : index
    %22 = vector.load %arg3[%c0_7, %c0_8] : memref<1x64xbf16, #tpu.memory_space<vmem>>, vector<1x64xbf16>
    %23 = arith.extf %22 : vector<1x64xbf16> to vector<1x64xf32>
    %24 = vector.broadcast %23 : vector<1x64xf32> to vector<4x64xf32>
    %25 = arith.addf %21, %24 : vector<4x64xf32>
    %26 = arith.truncf %25 : vector<4x64xf32> to vector<4x64xbf16>
    %c0_9 = arith.constant 0 : index
    %c0_10 = arith.constant 0 : index
    %27 = vector.load %arg4[%c0_9, %c0_10] : memref<64x64xbf16, #tpu.memory_space<vmem>>, vector<64x64xbf16>
    %cst_11 = arith.constant dense<0.000000e+00> : vector<4x64xf32>
    %28 = tpu.matmul %26, %27, %cst_11 {dimension_numbers = #tpu.dot_dimension_numbers<[1], [0], [0], [1], [0, 0, 1, 1], [], []>} : vector<4x64xbf16>, vector<64x64xbf16>, vector<4x64xf32> -> vector<4x64xf32>
    %c0_12 = arith.constant 0 : index
    %c0_13 = arith.constant 0 : index
    %29 = vector.load %arg5[%c0_12, %c0_13] : memref<1x64xbf16, #tpu.memory_space<vmem>>, vector<1x64xbf16>
    %30 = arith.extf %29 : vector<1x64xbf16> to vector<1x64xf32>
    %31 = vector.broadcast %30 : vector<1x64xf32> to vector<4x64xf32>
    %32 = arith.addf %28, %31 : vector<4x64xf32>
    %33 = arith.truncf %32 : vector<4x64xf32> to vector<4x64xbf16>
    %c0_14 = arith.constant 0 : index
    %c0_15 = arith.constant 0 : index
    %34 = vector.load %arg6[%c0_14, %c0_15] : memref<4x64xbf16, #tpu.memory_space<vmem>>, vector<4x64xbf16>
    tpu.vector_store %arg6[%c0_14, %c0_15], %33 {strides = array<i32>} : memref<4x64xbf16, #tpu.memory_space<vmem>>, vector<4x64xbf16>,
    return
  }
  func.func @transform_0(%arg0: i32) -> (i32, i32) {
    %c0_i32 = arith.constant 0 : i32
    %c0_i32_0 = arith.constant 0 : i32
    return %arg0, %c0_i32 : i32, i32
  }
  func.func @transform_1(%arg0: i32) -> (i32, i32) {
    %c0_i32 = arith.constant 0 : i32
    %c0_i32_0 = arith.constant 0 : i32
    %c0_i32_1 = arith.constant 0 : i32
    return %c0_i32, %c0_i32_0 : i32, i32
  }
  func.func @transform_2(%arg0: i32) -> (i32, i32) {
    %c0_i32 = arith.constant 0 : i32
    %c0_i32_0 = arith.constant 0 : i32
    %c0_i32_1 = arith.constant 0 : i32
    return %c0_i32, %c0_i32_0 : i32, i32
  }
  func.func @transform_3(%arg0: i32) -> (i32, i32) {
    %c0_i32 = arith.constant 0 : i32
    %c0_i32_0 = arith.constant 0 : i32
    %c0_i32_1 = arith.constant 0 : i32
    return %c0_i32, %c0_i32_0 : i32, i32
  }
  func.func @transform_4(%arg0: i32) -> (i32, i32) {
    %c0_i32 = arith.constant 0 : i32
    %c0_i32_0 = arith.constant 0 : i32
    %c0_i32_1 = arith.constant 0 : i32
    return %c0_i32, %c0_i32_0 : i32, i32
  }
  func.func @transform_5(%arg0: i32) -> (i32, i32) {
    %c0_i32 = arith.constant 0 : i32
    %c0_i32_0 = arith.constant 0 : i32
    return %arg0, %c0_i32 : i32, i32
  }
}

</mosaic_0001>

<bundles_post_ra>
// kernel: text_encoder_forward.9
= control target key start
LH: loop header
LB: loop body
LE: loop exit
PB: predicated region body
PF: predicated region fallthrough
CT: control target
= control target key end

     0   :  { %vm24_vm0 = vcmask 519168   ;;  %s277_s0 = inlined_call_operand.vmem [shape: bf16[4,64], index: 0, kind: input, shape index: {}]   ;;  %s278_s1 = inlined_call_operand.vmem [shape: bf16[1,64], index: 1, kind: input, shape index: {}]   ;;  %s279_s2 = inlined_call_operand.vmem [shape: bf16[1,64], index: 2, kind: input, shape index: {}]   ;;  %s280_s3 = inlined_call_operand.vmem [shape: bf16[64,64], index: 3, kind: input, shape index: {}]   ;;  %s281_s4 = inlined_call_operand.vmem [shape: bf16[1,64], index: 4, kind: input, shape index: {}]   ;;  %s282_s5 = inlined_call_operand.hbm [shape: bf16[4,64], index: 5, kind: output, shape index: {}]  }
   0x1   :  { %v22_v0 = vld [vmem:[%s277_s0] sm:$0x3] }
   0x2   :  { %v23_v1 = vunpack.c.l.bf16 %v22_v0 }
   0x4   :  { %v25_v2 = vsel %vm24_vm0, %v23_v1, 0.0 }
   0x5   :  { %10 = vsyncpa [#allocation3], 0  ;;  %26 = vadd.xlane.f32.xlu0 %v25_v2  ;;  %v178_v8 = vld [vmem:[%s280_s3] sm:$0xff]   ;;  %v208_v9 = vmov 0.0   ;;  %v179_v10 = vld [vmem:[%s280_s3 + $0x8] sm:$0xff]   ;;  %vm209_vm1 = vmmov 0   ;;  %v41_v15 = vlaneseq }
   0x6   :  { %163 = vmatprep.subr.bf16.mxu0 %v208_v9  ;;  %v180_v11 = vld [vmem:[%s280_s3 + $0x10] sm:$0xff]   ;;  %v181_v12 = vld [vmem:[%s280_s3 + $0x18] sm:$0xff]   ;;  %171 = vmatprep.mubr.msk.bf16.mxu0 %vm209_vm1, %v208_v9  ;;  %v39_v18 = vld [vmem:[%s278_s1] sm:$0x1]  ;;  %vm92_vm2 = vcmask 523264   ;;  %s210_s1 = smov [#allocation2]  }
   0x7   :  { %164 = vmatpush3.bf16.msra.mxu0 %v178_v8  ;;  %v42_v17 = vshrl.u32 %v41_v15, 7  ;;  %v46_v19 = vld [vmem:[%s279_s2] sm:$0x1]  ;;  %v40_v20 = vunpack.c.l.bf16 %v39_v18  ;;  %s145_s2 = sshll.u32 %s210_s1, 4  ;;  %vm137_vm3 = vcmask 517120   ;;  %s146_s2 = int_to_ptr.vmem [resolvable:$true] %s145_s2 }
   0x8   :  { %165 = vmatprep.subr.bf16.mxu0 %v208_v9  ;;  %v47_v22 = vunpack.c.l.bf16 %v46_v19  ;;  %v62_v30 = vld [vmem:[%s281_s4] sm:$0x1]  ;;  %s184_s7 = scalar_lea.vmem %s146_s2, 32  ;;  %p189_p1 = scmp.lt.s32.totalorder %s146_s2, %s146_s2 }
   0x9   :  { %v43_v21 = vsub.s32 0, %v42_v17  ;;  %v63_v31 = vunpack.c.l.bf16 %v62_v30  ;;  %p185_p0 = scmp.ne.s32.totalorder %s146_s2, %s184_s7  ;;  %p190_p2 = scmp.lt.s32.totalorder %s184_s7, %s184_s7 }
   0xb   :  { %166 = vmatpush3.bf16.msra.mxu0 %v179_v10  ;;  %v44_v23 = vrot.slane %v40_v20, %v43_v21  ;;  %v51_v26 = vrot.slane %v47_v22, %v43_v21  ;;  %v67_v32 = vrot.slane %v63_v31, %v43_v21  ;;  %p191_p3 = por %p190_p2, %p189_p1 }
   0xc   :  { %167 = vmatprep.subr.bf16.mxu0 %v208_v9 }
   0xd   :  { %p192_p4 = pnand %p191_p3, %p185_p0 }
   0xf   :  { %168 = vmatpush3.bf16.msra.mxu0 %v180_v11 }
  0x10   :  { %169 = vmatprep.subr.bf16.mxu0 %v208_v9 }
  0x13   :  { %170 = vmatpush3.bf16.msra.mxu0 %v181_v12 }
  0x92   :  { %v27_v3 = vpop.xlane.xlu0 %26 }
  0x93   :  { %v29_v4 = vmul.f32 0.015625, %v27_v3 }
  0x95   :  { %v30_v5 = vsub.f32 %v23_v1, %v29_v4 }
  0x97   :  { %v31_v6 = vmul.f32 %v30_v5, %v30_v5 }
  0x99   :  { %v32_v7 = vsel %vm24_vm0, %v31_v6, 0.0 }
  0x9a   :  { %33 = vadd.xlane.f32.xlu0 %v32_v7 }
 0x127   :  { %v34_v13 = vpop.xlane.xlu0 %33 }
 0x128   :  { %v35_v14 = vmul.f32 0.015625, %v34_v13 }
 0x12a   :  { %v36_v16 = vadd.f32 1e-05, %v35_v14 }
 0x12c   :  { %182 = vrsqrt.f32 %v36_v16 }
 0x136   :  { %v183_v24 = vpop.eup %182 }
 0x137   :  { %v38_v25 = vmul.f32 %v183_v24, %v30_v5 }
 0x139   :  { %v45_v27 = vmul.f32 %v44_v23, %v38_v25 }
 0x13b   :  { %v52_v28 = vadd.f32 %v51_v26, %v45_v27 }
 0x13d   :  { %v53_v29 = vpack.c.bf16 %v52_v28, %v52_v28 }
 0x13f   :  { %172 = vmatmul.mubr.msk.bf16.vlgmr.msra.gmra.mrb[0].mxu0 %vm92_vm2, %v53_v29 }
 0x212   :  { %v130_v33 = vpop.f32.mrb[0].mxu0 }
 0x213   :  { %v131_v34 = vadd.f32 %v130_v33, %v67_v32  ;;  %v173_v35 = vpop.f32.mrb[1].mxu0 }
 0x214   :  { %v133_v36 = vpop.f32.mrb[2].mxu0 }
 0x215   :  { %v136_v37 = vpack.c.bf16 %v131_v34, %v131_v34  ;;  %v174_v38 = vpop.f32.mrb[3].mxu0 }
 0x217   :  { %138 = vst.msk [vmem:[#allocation2] sm:$0x3] %vm137_vm3, %v136_v37 }
 0x218   :  { %195 = shalt.err (!%p192_p4)
}
 0x219   :  { %s196_s9 = scalar_lea.hbm %s282_s5, 32 }
 0x21a   :  { %p197_p5 = scmp.ne.s32.totalorder %s282_s5, %s196_s9  ;;  %p200_p6 = scmp.lt.u32.totalorder %s196_s9, %s282_s5 }
 0x21c   :  { %p202_p7 = pnand %p200_p6, %p197_p5 }
 0x21e   :  { %205 = shalt.err (!%p202_p7)
}
 0x21f   :  { %148 = dma.vmem_to_hbm [thread:$0]  %s146_s2, 32, %s282_s5, [#allocation3]  }
 0x220   :  { %206 = dma.done.wait [#allocation3], 32  }
 0x221   :  { %207 = vsyncadd [#allocation3], 4294967264 }
 0x222   :  { %152 = vsyncpa [#allocation3], 1 }

// kernel: text_encoder_forward.6
= control target key start
LH: loop header
LB: loop body
LE: loop exit
PB: predicated region body
PF: predicated region fallthrough
CT: control target
= control target key end

     0   :  { %s901_s24 = smov 0   ;;  %s1032_s0 = inlined_call_operand.vmem [shape: bf16[32,64], index: 0, kind: input, shape index: {}, may-alias: {0,7}]   ;;  %s1033_s1 = inlined_call_operand.vmem [shape: bf16[1,64], index: 1, kind: input, shape index: {}]   ;;  %s1034_s2 = inlined_call_operand.vmem [shape: bf16[1,64], index: 2, kind: input, shape index: {}]   ;;  %s1035_s3 = inlined_call_operand.vmem [shape: bf16[64,256], index: 3, kind: input, shape index: {}]   ;;  %s1036_s4 = inlined_call_operand.vmem [shape: bf16[1,256], index: 4, kind: input, shape index: {}]   ;;  %s1037_s5 = inlined_call_operand.vmem [shape: bf16[256,64], index: 5, kind: input, shape index: {}]   ;;  %s1038_s6 = inlined_call_operand.vmem [shape: bf16[1,64], index: 6, kind: input, shape index: {}]   ;;  %s1039_s7 = inlined_call_operand.vmem [shape: bf16[32,64], index: 7, kind: output, shape index: {}, may-alias: {0,7}]  }
   0x1 LB: > { %s725_s25 = sadd.s32 4294967295, %s858_s24   ;;  %p729_p0 = scmp.ge.s32.totalorder %s858_s24, 1  ;;  %s858_s24 = sphi %s901_s24, %s17_s24  }
   0x2   : > { %p238_p1 = scmp.lt.s32.totalorder %s858_s24, 3 }
   0x4   : > { %p239_p2 = pnand %p729_p0, %p238_p1 }
   0x5   : > { %s730_s26 = sshll.u32 (!%p239_p2), %s725_s25, 1  ;;  %vm287_vm0 = vcmask (!%p239_p2), 523264   ;;  %v804_v15 = vld [vmem:[%s1035_s3 + $0x4] ss:$8 sps:$4 sm:$0xff] (!%p239_p2)   ;;  %v806_v16 = vld [vmem:[%s1035_s3] ss:$8 sps:$4 sm:$0xff] (!%p239_p2)   ;;  %v317_v28 = vlaneseq (!%p239_p2) }
   0x6   : > { %242 = sbr.rel (%p239_p2) target bundleno = 812 (0x32c), region = 48  ;;  %p271_p3 = scmp.lt.s32.totalorder (!%p239_p2), %s730_s26, 3  ;;  %404 = vmatprep.subr.bf16.mxu0 (!%p239_p2), %v804_v15  ;;  %v807_v17 = vld [vmem:[%s1035_s3 + $0x14] ss:$8 sps:$4 sm:$0xff] (!%p239_p2)   ;;  %v809_v18 = vld [vmem:[%s1035_s3 + $0x10] ss:$8 sps:$4 sm:$0xff] (!%p239_p2)  }
   0x7   : > { %405 = vmatpush1.bf16.msra.mxu0 (!%p239_p2), %v806_v16  ;;  %v810_v19 = vld [vmem:[%s1035_s3 + $0x24] ss:$8 sps:$4 sm:$0xff] (!%p239_p2)   ;;  %v812_v20 = vld [vmem:[%s1035_s3 + $0x20] ss:$8 sps:$4 sm:$0xff] (!%p239_p2)   ;;  %v813_v21 = vld [vmem:[%s1035_s3 + $0x34] ss:$8 sps:$4 sm:$0xff] (!%p239_p2)  }
   0x8   : > { %406 = vmatprep.subr.bf16.mxu0 (!%p239_p2), %v807_v17  ;;  %v815_v22 = vld [vmem:[%s1035_s3 + $0x30] ss:$8 sps:$4 sm:$0xff] (!%p239_p2)   ;;  %v860_v23 = vmov (!%p239_p2), 0   ;;  %v318_v31 = vshrl.u32 (!%p239_p2), %v317_v28, 7  ;;  %v315_v32 = vld [vmem:[%s1033_s1] sm:$0x1] (!%p239_p2) }
   0x9   : > { %436 = vmatprep.mubr.bf16.mxu0 (!%p239_p2), %v860_v23  ;;  %v316_v33 = vunpack.c.l.bf16 (!%p239_p2), %v315_v32  ;;  %v323_v35 = vld [vmem:[%s1034_s2] sm:$0x1] (!%p239_p2)  ;;  %v818_v50 = vld [vmem:[%s1037_s5 + $0x48] sm:$0xff] (!%p239_p2)   ;;  %v820_v52 = vld [vmem:[%s1037_s5 + $0x50] sm:$0xff] (!%p239_p2)   ;;  %vm666_vm1 = vcmask (!%p239_p2), 519168  }
   0xa   : > { %v956_v34 = vsub.s32 (!%p239_p2), 0, %v318_v31  ;;  %v324_v39 = vunpack.c.l.bf16 (!%p239_p2), %v323_v35  ;;  %v816_v48 = vld [vmem:[%s1037_s5 + $0x40] sm:$0xff] (!%p239_p2)   ;;  %v819_v51 = vld [vmem:[%s1037_s5 + $0x8] sm:$0xff] (!%p239_p2)   ;;  %v821_v53 = vld [vmem:[%s1037_s5 + $0x10] sm:$0xff] (!%p239_p2)  }
   0xb   : > { %407 = vmatpush1.bf16.msra.mxu0 (!%p239_p2), %v809_v18  ;;  %v817_v49 = vld [vmem:[%s1037_s5] sm:$0xff] (!%p239_p2)   ;;  %773 = vmatprep.subr.bf16.mxu1 (!%p239_p2), %v816_v48  ;;  %v822_v54 = vld [vmem:[%s1037_s5 + $0x58] sm:$0xff] (!%p239_p2)   ;;  %v826_v58 = vld [vmem:[%s1037_s5 + $0x68] sm:$0xff] (!%p239_p2)  }
   0xc   : > { %408 = vmatprep.subr.bf16.mxu0 (!%p239_p2), %v810_v19  ;;  %v320_v38 = vrot.slane (!%p239_p2), %v316_v33, %v956_v34  ;;  %v328_v43 = vrot.slane (!%p239_p2), %v324_v39, %v956_v34  ;;  %774 = vmatpush3.bf16.msra.mxu1 (!%p239_p2), %v817_v49  ;;  %v823_v55 = vld [vmem:[%s1037_s5 + $0x18] sm:$0xff] (!%p239_p2)   ;;  %v824_v56 = vld [vmem:[%s1037_s5 + $0x60] sm:$0xff] (!%p239_p2)   ;;  %v827_v59 = vld [vmem:[%s1037_s5 + $0x28] sm:$0xff] (!%p239_p2)  }
   0xd   : > { %s1041_s26 = smov (!%p271_p3, %s730_s26), 3  ;;  %775 = vmatprep.subr.bf16.mxu1 %v818_v50  ;;  %v825_v57 = vld [vmem:[%s1037_s5 + $0x20] sm:$0xff]   ;;  %v828_v60 = vld [vmem:[%s1037_s5 + $0x70] sm:$0xff]   ;;  %v830_v62 = vld [vmem:[%s1037_s5 + $0x78] sm:$0xff]  }
   0xe   : > { %s731_s27 = sshll.u32 %s1041_s26, 2  ;;  %v829_v61 = vld [vmem:[%s1037_s5 + $0x30] sm:$0xff]   ;;  %v831_v63 = vld [vmem:[%s1037_s5 + $0x38] sm:$0xff]  }
   0xf   : > { %s274_s30 = scalar_lea.vmem %s1032_s0, %s731_s27  ;;  %409 = vmatpush1.bf16.msra.mxu0 %v812_v20  ;;  %s280_s29 = scalar_lea.vmem %s1039_s7, %s731_s27 }
  0x10   : > { %v770_v0 = vld [vmem:[%s274_s30] sm:$0xff]   ;;  %410 = vmatprep.subr.bf16.mxu0 %v813_v21  ;;  %776 = vmatpush3.bf16.msra.mxu1 %v819_v51 }
  0x11   : > { %v917_v1 = vunpack.c.l.bf16 %v770_v0  ;;  %v919_v2 = vunpack.c.h.bf16 %v770_v0  ;;  %777 = vmatprep.subr.bf16.mxu1 %v820_v52  ;;  %v340_v0 = vld [vmem:[%s1036_s4] sm:$0x3] }
  0x13   : > { %v288_v3 = vsel %vm287_vm0, %v917_v1, 0.0  ;;  %v291_v4 = vsel %vm287_vm0, %v919_v2, 0.0  ;;  %411 = vmatpush1.bf16.msra.mxu0 %v815_v22 }
  0x14   : > { %289 = vadd.xlane.f32.xlu0 %v288_v3  ;;  %778 = vmatpush3.bf16.msra.mxu1 %v821_v53  ;;  %v341_v3 = vunpack.c.l.bf16 %v340_v0 }
  0x15   : > { %779 = vmatprep.subr.bf16.mxu1 %v822_v54 }
  0x18   : > { %292 = vadd.xlane.f32.xlu0 %v291_v4  ;;  %780 = vmatpush3.bf16.msra.mxu1 %v823_v55  ;;  %v349_v4 = vsub.s32 2, %v318_v31 }
  0x19   : > { %781 = vmatprep.subr.bf16.mxu1 %v824_v56 }
  0x1c   : > { %782 = vmatpush3.bf16.msra.mxu1 %v825_v57 }
  0x1d   : > { %783 = vmatprep.subr.bf16.mxu1 %v826_v58 }
  0x20   : > { %784 = vmatpush3.bf16.msra.mxu1 %v827_v59 }
  0x21   : > { %785 = vmatprep.subr.bf16.mxu1 %v828_v60 }
  0x24   : > { %786 = vmatpush3.bf16.msra.mxu1 %v829_v61 }
  0x25   : > { %787 = vmatprep.subr.bf16.mxu1 %v830_v62 }
  0x28   : > { %788 = vmatpush3.bf16.msra.mxu1 %v831_v63 }
  0xa1   : > { %v290_v5 = vpop.xlane.xlu0 %289 }
  0xa2   : > { %v295_v6 = vmul.f32 0.015625, %v290_v5  ;;  %v346_v5 = vrot.slane %v341_v3, %v956_v34 }
  0xa4   : > { %v297_v7 = vsub.f32 %v917_v1, %v295_v6  ;;  %v350_v6 = vrot.slane %v341_v3, %v349_v4 }
  0xa5   : > { %v293_v8 = vpop.xlane.xlu0 %292 }
  0xa6   : > { %v296_v9 = vmul.f32 0.015625, %v293_v8  ;;  %v299_v10 = vmul.f32 %v297_v7, %v297_v7  ;;  %v360_v8 = vrot.slane %v350_v6, %v956_v34 }
  0xa8   : > { %v298_v11 = vsub.f32 %v919_v2, %v296_v9  ;;  %v301_v12 = vsel %vm287_vm0, %v299_v10, 0.0 }
  0xa9   : > { %302 = vadd.xlane.f32.xlu1 %v301_v12 }
  0xaa   : > { %v300_v13 = vmul.f32 %v298_v11, %v298_v11 }
  0xac   : > { %v304_v14 = vsel %vm287_vm0, %v300_v13, 0.0 }
  0xad   : > { %305 = vadd.xlane.f32.xlu1 %v304_v14 }
 0x136   : > { %v303_v24 = vpop.xlane.xlu1 %302 }
 0x137   : > { %v307_v25 = vmul.f32 0.015625, %v303_v24 }
 0x139   : > { %v309_v26 = vadd.f32 1e-05, %v307_v25 }
 0x13a   : > { %v306_v27 = vpop.xlane.xlu1 %305 }
 0x13b   : > { %832 = vrsqrt.f32 %v309_v26  ;;  %v308_v29 = vmul.f32 0.015625, %v306_v27 }
 0x13d   : > { %v310_v30 = vadd.f32 1e-05, %v308_v29 }
 0x13f   : > { %834 = vrsqrt.f32 %v310_v30 }
 0x145   : > { %v833_v36 = vpop.eup %832 }
 0x146   : > { %v313_v37 = vmul.f32 %v833_v36, %v297_v7  ;;  %v356_v7 = vrot.slane %v346_v5, %v956_v34 }
 0x148   : > { %v321_v42 = vmul.f32 %v320_v38, %v313_v37 }
 0x149   : > { %v835_v40 = vpop.eup %834 }
 0x14a   : > { %v314_v41 = vmul.f32 %v835_v40, %v298_v11  ;;  %v329_v45 = vadd.f32 %v328_v43, %v321_v42 }
 0x14c   : > { %v322_v44 = vmul.f32 %v320_v38, %v314_v41 }
 0x14e   : > { %v330_v46 = vadd.f32 %v328_v43, %v322_v44  ;;  %v513_v44 = vld [vmem:[%s1038_s6] sm:$0x1] }
 0x150   : > { %v331_v47 = vpack.c.bf16 %v330_v46, %v329_v45  ;;  %v514_v45 = vunpack.c.l.bf16 %v513_v44 }
 0x152   : > { %742 = vmatmul.mubr.msk.bf16.vlgmr.msra.gmra.mrb[0].mxu0 %vm287_vm0, %v331_v47  ;;  %v518_v47 = vrot.slane %v514_v45, %v956_v34 }
 0x225   : > { %v438_v9 = vpop.f32.mrb[0].mxu0 }
 0x226   : > { %v439_v10 = vadd.f32 %v438_v9, %v356_v7  ;;  %v440_v11 = vpop.f32.mrb[1].mxu0 }
 0x227   : > { %v441_v12 = vadd.f32 %v440_v11, %v360_v8  ;;  %v442_v13 = vpop.f32.mrb[2].mxu0 }
 0x228   : > { %v743_v14 = vmul.f32 -1.702, %v439_v10  ;;  %v443_v15 = vadd.f32 %v442_v13, %v356_v7  ;;  %v444_v16 = vpop.f32.mrb[3].mxu0 }
 0x229   : > { %v744_v17 = vmul.f32 -1.702, %v441_v12  ;;  %v445_v18 = vadd.f32 %v444_v16, %v360_v8 }
 0x22a   : > { %v455_v19 = vmul.f32 1.442695, %v743_v14  ;;  %v745_v20 = vmul.f32 -1.702, %v443_v15 }
 0x22b   : > { %v457_v21 = vmul.f32 1.442695, %v744_v17  ;;  %v746_v22 = vmul.f32 -1.702, %v445_v18 }
 0x22c   : > { %836 = vpow2.f32 %v455_v19  ;;  %v459_v23 = vmul.f32 1.442695, %v745_v20 }
 0x22d   : > { %838 = vpow2.f32 %v457_v21  ;;  %v461_v24 = vmul.f32 1.442695, %v746_v22 }
 0x22e   : > { %840 = vpow2.f32 %v459_v23 }
 0x22f   : > { %842 = vpow2.f32 %v461_v24 }
 0x236   : > { %v837_v25 = vpop.eup %836 }
 0x237   : > { %v839_v26 = vpop.eup %838  ;;  %v463_v27 = vadd.f32 1.0, %v837_v25 }
 0x238   : > { %v841_v28 = vpop.eup %840  ;;  %v464_v29 = vadd.f32 1.0, %v839_v26 }
 0x239   : > { %v843_v30 = vpop.eup %842  ;;  %844 = vrcp.f32 %v463_v27  ;;  %v465_v31 = vadd.f32 1.0, %v841_v28 }
 0x23a   : > { %846 = vrcp.f32 %v464_v29  ;;  %v466_v32 = vadd.f32 1.0, %v843_v30 }
 0x23b   : > { %848 = vrcp.f32 %v465_v31 }
 0x23c   : > { %850 = vrcp.f32 %v466_v32 }
 0x243   : > { %v845_v33 = vpop.eup %844 }
 0x244   : > { %v847_v35 = vpop.eup %846  ;;  %v475_v38 = vmul.f32 %v845_v33, %v439_v10 }
 0x245   : > { %v849_v36 = vpop.eup %848  ;;  %v476_v40 = vmul.f32 %v847_v35, %v441_v12 }
 0x246   : > { %v851_v37 = vpop.eup %850  ;;  %v477_v39 = vmul.f32 %v849_v36, %v443_v15 }
 0x247   : > { %v478_v41 = vmul.f32 %v851_v37, %v445_v18 }
 0x248   : > { %v479_v42 = vpack.c.bf16 %v477_v39, %v475_v38 }
 0x249   : > { %v480_v43 = vpack.c.bf16 %v478_v41, %v476_v40 }
 0x24b   : > { %647 = vmatprep.mubr.bf16.mxu1 %v480_v43 }
 0x24c   : > { %648 = vmatmul.mubr.bf16.vlgmr.msra.gmra.mrb[0].mxu1 %v479_v42 }
 0x31f   : > { %v789_v46 = vpop.f32.mrb[0].mxu1 }
 0x320   : > { %v790_v48 = vpop.f32.mrb[1].mxu1 }
 0x321   : > { %v791_v49 = vadd.f32 %v790_v48, %v789_v46  ;;  %v792_v50 = vpop.f32.mrb[2].mxu1 }
 0x322   : > { %v793_v51 = vpop.f32.mrb[3].mxu1 }
 0x323   : > { %v650_v52 = vadd.f32 %v791_v49, %v518_v47  ;;  %v794_v53 = vadd.f32 %v793_v51, %v792_v50 }
 0x325   : > { %v656_v54 = vadd.f32 %v917_v1, %v650_v52  ;;  %v653_v55 = vadd.f32 %v794_v53, %v518_v47 }
 0x327   : > { %v767_v56 = vpack.c.bf16 %v656_v54, %v656_v54  ;;  %v657_v57 = vadd.f32 %v919_v2, %v653_v55 }
 0x329   : > { %667 = vst.msk [vmem:[%s280_s29] sm:$0xf] %vm666_vm1, %v767_v56  ;;  %v768_v34 = vpack.c.bf16 %v657_v57, %v657_v57 }
 0x32b   : > { %668 = vst.msk [vmem:[%s280_s29 + $0x4] sm:$0xf] %vm666_vm1, %v768_v34 }
 0x32c PF: > { %s17_s24 = sadd.s32 1, %s858_s24  }
 0x32d   : > { %p14_p4 = scmp.ge.s32.totalorder %s17_s24, 4  }
 0x32f   :  { %16 = sbr.rel (!%p14_p4) target bundleno = 1 (0x1), region = 78 }

// kernel: text_encoder_forward.5
= control target key start
LH: loop header
LB: loop body
LE: loop exit
PB: predicated region body
PF: predicated region fallthrough
CT: control target
= control target key end

     0   :  { %s2019_s24 = smov 0   ;;  %s2269_s0 = inlined_call_operand.vmem [shape: bf16[4,8,64], index: 0, kind: input, shape index: {}, may-alias: {0,7}]   ;;  %s2270_s1 = inlined_call_operand.vmem [shape: bf16[1,64], index: 1, kind: input, shape index: {}]   ;;  %s2271_s2 = inlined_call_operand.vmem [shape: bf16[1,64], index: 2, kind: input, shape index: {}]   ;;  %s2272_s3 = inlined_call_operand.vmem [shape: bf16[64,192], index: 3, kind: input, shape index: {}]   ;;  %s2273_s4 = inlined_call_operand.vmem [shape: bf16[1,192], index: 4, kind: input, shape index: {}]   ;;  %s2274_s5 = inlined_call_operand.vmem [shape: bf16[64,64], index: 5, kind: input, shape index: {}]   ;;  %s2275_s6 = inlined_call_operand.vmem [shape: bf16[1,64], index: 6, kind: input, shape index: {}]   ;;  %s2276_s7 = inlined_call_operand.vmem [shape: bf16[4,8,64], index: 7, kind: output, shape index: {}, may-alias: {0,7}]  }
   0x1 LB: > { %s1643_s25 = sadd.s32 4294967295, %s1966_s24   ;;  %p1647_p0 = scmp.ge.s32.totalorder %s1966_s24, 1  ;;  %s1966_s24 = sphi %s2019_s24, %s17_s24  }
   0x2   : > { %p238_p1 = scmp.lt.s32.totalorder %s1966_s24, 3 }
   0x4   : > { %p239_p2 = pnand %p1647_p0, %p238_p1 }
   0x5   : > { %s1648_s26 = sshll.u32 (!%p239_p2), %s1643_s25, 1  ;;  %vm288_vm0 = vcmask (!%p239_p2), 523264   ;;  %v1893_v15 = vld [vmem:[%s2272_s3 + $0x4] ss:$8 sps:$4 sm:$0xff] (!%p239_p2)   ;;  %v1895_v16 = vld [vmem:[%s2272_s3] ss:$8 sps:$4 sm:$0xff] (!%p239_p2)   ;;  %v318_v28 = vlaneseq (!%p239_p2) }
   0x6   : > { %242 = sbr.rel (%p239_p2) target bundleno = 3403 (0xd4b), region = 48  ;;  %p271_p3 = scmp.lt.s32.totalorder (!%p239_p2), %s1648_s26, 3  ;;  %405 = vmatprep.subr.bf16.mxu0 (!%p239_p2), %v1893_v15  ;;  %v1896_v17 = vld [vmem:[%s2272_s3 + $0x14] ss:$8 sps:$4 sm:$0xff] (!%p239_p2)   ;;  %v1898_v18 = vld [vmem:[%s2272_s3 + $0x10] ss:$8 sps:$4 sm:$0xff] (!%p239_p2)  }
   0x7   : > { %406 = vmatpush1.bf16.msra.mxu0 (!%p239_p2), %v1895_v16  ;;  %v1899_v19 = vld [vmem:[%s2272_s3 + $0x24] ss:$8 sps:$4 sm:$0xff] (!%p239_p2)   ;;  %v1901_v20 = vld [vmem:[%s2272_s3 + $0x20] ss:$8 sps:$4 sm:$0xff] (!%p239_p2)   ;;  %v1902_v21 = vld [vmem:[%s2272_s3 + $0x34] ss:$8 sps:$4 sm:$0xff] (!%p239_p2)  }
   0x8   : > { %407 = vmatprep.subr.bf16.mxu0 (!%p239_p2), %v1896_v17  ;;  %v1904_v22 = vld [vmem:[%s2272_s3 + $0x30] ss:$8 sps:$4 sm:$0xff] (!%p239_p2)   ;;  %v1968_v23 = vmov (!%p239_p2), 0   ;;  %v2072_v31 = vshrl.u32 (!%p239_p2), %v318_v28, 7  ;;  %v316_v32 = vld [vmem:[%s2270_s1] sm:$0x1] (!%p239_p2) }
   0x9   : > { %437 = vmatprep.mubr.bf16.mxu0 (!%p239_p2), %v1968_v23  ;;  %v317_v33 = vunpack.c.l.bf16 (!%p239_p2), %v316_v32  ;;  %v324_v35 = vld [vmem:[%s2271_s2] sm:$0x1] (!%p239_p2)  ;;  %vm460_vm1 = vcmask (!%p239_p2), 1043456   ;;  %vm461_vm2 = vcmask (!%p239_p2), 523268   ;;  %v1969_v62 = vmov (!%p239_p2), 0.0   ;;  %s1971_s10 = smov (!%p239_p2), 64  }
   0xa   : > { %v2078_v34 = vsub.s32 (!%p239_p2), 0, %v2072_v31  ;;  %v325_v39 = vunpack.c.l.bf16 (!%p239_p2), %v324_v35  ;;  %v341_v48 = vld [vmem:[%s2273_s4] sm:$0x3] (!%p239_p2)  ;;  %v350_v50 = vsub.s32 (!%p239_p2), 2, %v2072_v31  ;;  %vm462_vm3 = vmor (!%p239_p2), %vm461_vm2, %vm460_vm1  ;;  %1766 = vmatprep.subr.bf16.mxu1 (!%p239_p2), %v1969_v62  ;;  %vm1970_vm4 = vmmov (!%p239_p2), 0   ;;  %s1973_s11 = smov (!%p239_p2), 48  }
   0xb   : > { %408 = vmatpush1.bf16.msra.mxu0 (!%p239_p2), %v1898_v18  ;;  %v342_v49 = vunpack.c.l.bf16 (!%p239_p2), %v341_v48  ;;  %1768 = vmatprep.mubr.msk.bf16.mxu1 (!%p239_p2), %vm1970_vm4, %v1969_v62  ;;  %vm482_vm5 = vcmask (!%p239_p2), 130048   ;;  %v468_v16 = vand.u32 (!%p239_p2), 127, %v318_v28  ;;  %v1972_v17 = vmov (!%p239_p2), -1e+30   ;;  %s1974_s12 = smov (!%p239_p2), 112   ;;  %s1975_s13 = smov (!%p239_p2), 32  }
   0xc   : > { %409 = vmatprep.subr.bf16.mxu0 (!%p239_p2), %v1899_v19  ;;  %v321_v38 = vrot.slane (!%p239_p2), %v317_v33, %v2078_v34  ;;  %v329_v43 = vrot.slane (!%p239_p2), %v325_v39, %v2078_v34  ;;  %vm580_vm7 = vcmask (!%p239_p2), 64512   ;;  %vm699_vm8 = vcmask (!%p239_p2), 125952   ;;  %s1976_s14 = smov (!%p239_p2), 96   ;;  %s1977_s15 = smov (!%p239_p2), 16  }
   0xd   : > { %s2278_s26 = smov (!%p271_p3, %s1648_s26), 3  ;;  %v347_v51 = vrot.slane %v342_v49, %v2078_v34  ;;  %v351_v52 = vrot.slane %v342_v49, %v350_v50  ;;  %vm469_vm6 = vcmp.le.s32.totalorder %v468_v16, %v2072_v31  ;;  %s1978_s16 = smov 80   ;;  %vm960_vm9 = vcmask 257152  }
   0xe   : > { %s1649_s27 = sshll.u32 %s2278_s26, 2  ;;  %v2114_v18 = vsel %vm469_vm6, 0.0, %v1972_v17  ;;  %vm1221_vm10 = vcmask 388352   ;;  %vm1482_vm11 = vcmask 519552   ;;  %vm1584_vm12 = vcmask 519168  }
   0xf   : > { %s274_s30 = scalar_lea.vmem %s2269_s0, %s1649_s27  ;;  %410 = vmatpush1.bf16.msra.mxu0 %v1901_v20  ;;  %v357_v53 = vrot.slane %v347_v51, %v2078_v34  ;;  %v361_v54 = vrot.slane %v351_v52, %v2078_v34  ;;  %s280_s9 = scalar_lea.vmem %s2276_s7, %s1649_s27 }
  0x10   : > { %v1726_v0 = vld [vmem:[%s274_s30] sm:$0xff]   ;;  %411 = vmatprep.subr.bf16.mxu0 %v1902_v21 }
  0x11   : > { %v2035_v1 = vunpack.c.l.bf16 %v1726_v0  ;;  %v2037_v2 = vunpack.c.h.bf16 %v1726_v0 }
  0x13   : > { %v289_v3 = vsel %vm288_vm0, %v2035_v1, 0.0  ;;  %v292_v4 = vsel %vm288_vm0, %v2037_v2, 0.0  ;;  %412 = vmatpush1.bf16.msra.mxu0 %v1904_v22 }
  0x14   : > { %290 = vadd.xlane.f32.xlu0 %v289_v3  ;;  %1790 = vmatprep.subr.bf16.mxu0 %v1969_v62 }
  0x18   : > { %293 = vadd.xlane.f32.xlu0 %v292_v4 }
  0xa1   : > { %v291_v5 = vpop.xlane.xlu0 %290 }
  0xa2   : > { %v296_v6 = vmul.f32 0.015625, %v291_v5 }
  0xa4   : > { %v298_v7 = vsub.f32 %v2035_v1, %v296_v6 }
  0xa5   : > { %v294_v8 = vpop.xlane.xlu0 %293 }
  0xa6   : > { %v297_v9 = vmul.f32 0.015625, %v294_v8  ;;  %v300_v10 = vmul.f32 %v298_v7, %v298_v7 }
  0xa8   : > { %v299_v11 = vsub.f32 %v2037_v2, %v297_v9  ;;  %v302_v12 = vsel %vm288_vm0, %v300_v10, 0.0 }
  0xa9   : > { %303 = vadd.xlane.f32.xlu1 %v302_v12 }
  0xaa   : > { %v301_v13 = vmul.f32 %v299_v11, %v299_v11 }
  0xac   : > { %v305_v14 = vsel %vm288_vm0, %v301_v13, 0.0 }
  0xad   : > { %306 = vadd.xlane.f32.xlu1 %v305_v14 }
 0x136   : > { %v304_v24 = vpop.xlane.xlu1 %303 }
 0x137   : > { %v308_v25 = vmul.f32 0.015625, %v304_v24 }
 0x139   : > { %v310_v26 = vadd.f32 1e-05, %v308_v25 }
 0x13a   : > { %v307_v27 = vpop.xlane.xlu1 %306 }
 0x13b   : > { %1924 = vrsqrt.f32 %v310_v26  ;;  %v309_v29 = vmul.f32 0.015625, %v307_v27 }
 0x13d   : > { %v311_v30 = vadd.f32 1e-05, %v309_v29 }
 0x13f   : > { %1926 = vrsqrt.f32 %v311_v30 }
 0x145   : > { %v1925_v36 = vpop.eup %1924 }
 0x146   : > { %v314_v37 = vmul.f32 %v1925_v36, %v298_v7 }
 0x148   : > { %v322_v42 = vmul.f32 %v321_v38, %v314_v37 }
 0x149   : > { %v1927_v40 = vpop.eup %1926 }
 0x14a   : > { %v315_v41 = vmul.f32 %v1927_v40, %v299_v11  ;;  %v330_v45 = vadd.f32 %v329_v43, %v322_v42 }
 0x14c   : > { %v323_v44 = vmul.f32 %v321_v38, %v315_v41 }
 0x14e   : > { %v331_v46 = vadd.f32 %v329_v43, %v323_v44 }
 0x150   : > { %v332_v47 = vpack.c.bf16 %v331_v46, %v330_v45 }
 0x152   : > { %1660 = vmatmul.mubr.msk.bf16.vlgmr.msra.gmra.mrb[0].mxu0 %vm288_vm0, %v332_v47 }
 0x153   : > { %1792 = vmatprep.mubr.msk.bf16.mxu0 %vm1970_vm4, %v1969_v62 }
 0x225   : > { %v439_v55 = vpop.f32.mrb[0].mxu0 }
 0x226   : > { %v440_v56 = vadd.f32 %v439_v55, %v357_v53  ;;  %v441_v57 = vpop.f32.mrb[1].mxu0 }
 0x227   : > { %v442_v58 = vadd.f32 %v441_v57, %v361_v54  ;;  %v443_v59 = vpop.f32.mrb[2].mxu0 }
 0x228   : > { %v444_v60 = vadd.f32 %v443_v59, %v357_v53  ;;  %v445_v61 = vpop.f32.mrb[3].mxu0 }
 0x229   : > { %v1715_v63 = vpack.c.bf16 %v442_v58, %v440_v56  ;;  %v446_v0 = vadd.f32 %v445_v61, %v361_v54 }
 0x22b   : > { %463 = vst.msk [vmem:[#allocation2] sm:$0xff] %vm462_vm3, %v1715_v63  ;;  %v1716_v3 = vpack.c.bf16 %v446_v0, %v444_v60 }
 0x22d   : > { %464 = vst.msk [vmem:[#allocation2 + $0x8] sm:$0xff] %vm462_vm3, %v1716_v3 }
 0x232   : > { %v471_v4 = vld [vmem:[#allocation2] sm:$0xf]  ;;  %v475_v13 = vld [vmem:[#allocation2 + $0x4] sm:$0xf] }
 0x233   : > { %v1663_v5 = vcombine.low %v471_v4, %v471_v4  ;;  %v473_v11 = vmul.bf16 1048592000, %v471_v4  ;;  %v609_v15 = vsel %vm460_vm1, %v475_v13, 0  ;;  %v702_v44 = vld [vmem:[#allocation2] sm:$0xf] }
 0x234   : > { %v472_v6 = vld [vmem:[#allocation2 + $0x8] sm:$0xf]  ;;  %v704_v45 = vmul.bf16 1048592000, %v702_v44  ;;  %v1670_v46 = vcombine.low %v702_v44, %v702_v44  ;;  %v476_v58 = vld [vmem:[#allocation2 + $0xc] sm:$0xf] }
 0x235   : > { %480 = vrot.lane.b32.xlu0 %v1663_v5, %s1971_s10  ;;  %v1665_v7 = vcombine.low %v472_v6, %v472_v6  ;;  %v474_v14 = vmul.bf16 1048592000, %v472_v6  ;;  %v703_v31 = vld [vmem:[#allocation2 + $0x8] sm:$0xf]  ;;  %v655_v60 = vsel %vm460_vm1, %v476_v58, 0 }
 0x236   : > { %v1673_v32 = vcombine.low %v703_v31, %v703_v31  ;;  %v1669_v47 = vcombine.low %v704_v45, %v704_v45  ;;  %v705_v48 = vmul.bf16 1048592000, %v703_v31  ;;  %v964_v31 = vld [vmem:[#allocation2 + $0x8] sm:$0xf] }
 0x237   : > { %532 = vrot.lane.b32.xlu1 %v1665_v7, %s1971_s10 }
 0x238   : > { %v1672_v49 = vcombine.low %v705_v48, %v705_v48  ;;  %v1912_v48 = vld [vmem:[#allocation2 + $0x4] ss:$0 sps:$4 sm:$0xff]  }
 0x2a7   : > { %v481_v8 = vpop.permute.xlu0 %480 }
 0x2a8   : > { %v487_v9 = vsel %vm482_vm5, %v481_v8, 0 }
 0x2a9   : > { %1767 = vmatpush3.bf16.xpose.msra.mxu1 %v487_v9  ;;  %v533_v10 = vpop.permute.xlu1 %532 }
 0x2aa   : > { %1772 = vmatprep.subr.bf16.mxu1 %v1969_v62  ;;  %v538_v12 = vsel %vm482_vm5, %v533_v10, 0 }
 0x2b0   : > { %1769 = vmatmul.mubr.msk.bf16.vlgmr.msra.gmra.mrb[0].mxu1 %vm482_vm5, %v473_v11 }
 0x2b1   : > { %1773 = vmatpush3.bf16.xpose.msra.mxu1 %v538_v12  ;;  %1774 = vmatprep.mubr.msk.bf16.mxu1 %vm1970_vm4, %v1969_v62 }
 0x2b2   : > { %1778 = vmatprep.subr.bf16.mxu1 %v1969_v62 }
 0x2b8   : > { %1775 = vmatmul.mubr.msk.bf16.vlgmr.msra.gmra.mrb[4].mxu1 %vm482_vm5, %v474_v14 }
 0x2b9   : > { %1779 = vmatpush3.bf16.msra.mxu1 %v609_v15  ;;  %1780 = vmatprep.mubr.msk.bf16.mxu1 %vm1970_vm4, %v1969_v62 }
 0x2ba   : > { %1784 = vmatprep.subr.bf16.mxu1 %v1969_v62 }
 0x383   : > { %v523_v19 = vpop.f32.mrb[0].mxu1 }
 0x384   : > { %v524_v20 = vadd.f32 %v523_v19, %v2114_v18  ;;  %v1770_v21 = vpop.f32.mrb[1].mxu1 }
 0x385   : > { %v526_v22 = vpop.f32.mrb[2].mxu1 }
 0x386   : > { %v1771_v23 = vpop.f32.mrb[3].mxu1  ;;  %v581_v24 = vsel %vm580_vm7, %v524_v20, -inf }
 0x387   : > { %582 = vmax.xlane.f32.xlu1 %v581_v24 }
 0x38b   : > { %v574_v25 = vpop.f32.mrb[4].mxu1 }
 0x38c   : > { %v575_v26 = vadd.f32 %v574_v25, %v2114_v18  ;;  %v1776_v27 = vpop.f32.mrb[5].mxu1 }
 0x38d   : > { %v577_v28 = vpop.f32.mrb[6].mxu1 }
 0x38e   : > { %v1777_v29 = vpop.f32.mrb[7].mxu1  ;;  %v584_v30 = vsel %vm580_vm7, %v575_v26, -inf  ;;  %v1909_v28 = vld [vmem:[#allocation2 + $0xc] ss:$0 sps:$4 sm:$0xff]  }
 0x38f   : > { %585 = vmax.xlane.f32.xlu0 %v584_v30  ;;  %v963_v29 = vld [vmem:[#allocation2] sm:$0xf] }
 0x390   : > { %v1682_v30 = vcombine.low %v963_v29, %v963_v29 }
 0x398   : > { %772 = vrot.lane.b32.xlu1 %v1673_v32, %s1973_s11  ;;  %v1685_v32 = vcombine.low %v964_v31, %v964_v31 }
 0x414   : > { %v583_v33 = vpop.xlane.xlu1 %582 }
 0x415   : > { %v587_v35 = vsub.f32 %v524_v20, %v583_v33  ;;  %v966_v33 = vmul.bf16 1048592000, %v964_v31 }
 0x417   : > { %v589_v36 = vmul.f32 1.442695, %v587_v35  ;;  %v1684_v35 = vcombine.low %v966_v33, %v966_v33 }
 0x418   : > { %v773_v51 = vpop.permute.xlu1 %772 }
 0x419   : > { %1928 = vpow2.f32 %v589_v36  ;;  %v778_v3 = vsel %vm482_vm5, %v773_v51, 0 }
 0x41c   : > { %v586_v37 = vpop.xlane.xlu0 %585 }
 0x41d   : > { %v588_v38 = vsub.f32 %v575_v26, %v586_v37 }
 0x41f   : > { %v591_v39 = vmul.f32 1.442695, %v588_v38 }
 0x421   : > { %1930 = vpow2.f32 %v591_v39 }
 0x423   : > { %v1929_v40 = vpop.eup %1928 }
 0x424   : > { %v593_v41 = vsel %vm580_vm7, %v1929_v40, 0.0 }
 0x425   : > { %594 = vadd.xlane.f32.xlu0 %v593_v41 }
 0x42b   : > { %v1931_v42 = vpop.eup %1930 }
 0x42c   : > { %v596_v43 = vsel %vm580_vm7, %v1931_v42, 0.0 }
 0x42d   : > { %597 = vadd.xlane.f32.xlu1 %v596_v43 }
 0x43b   : > { %716 = vrot.lane.b32.xlu0 %v1670_v46, %s1973_s11 }
 0x43e   : > { %711 = vrot.lane.b32.xlu1 %v1669_v47, %s1974_s12 }
 0x442   : > { %767 = vrot.lane.b32.xlu1 %v1672_v49, %s1974_s12  ;;  %v965_v49 = vmul.bf16 1048592000, %v963_v29 }
 0x4b2   : > { %v595_v50 = vpop.xlane.xlu0 %594 }
 0x4b3   : > { %1932 = vrcp.f32 %v595_v50  ;;  %v1681_v50 = vcombine.low %v965_v49, %v965_v49 }
 0x4b6   : > { %v717_v52 = vpop.permute.xlu0 %716 }
 0x4b7   : > { %v722_v53 = vsel %vm482_vm5, %v717_v52, 0 }
 0x4b8   : > { %1791 = vmatpush3.bf16.xpose.msra.mxu0 %v722_v53 }
 0x4b9   : > { %1802 = vmatprep.subr.bf16.mxu0 %v1969_v62 }
 0x4ba   : > { %v598_v54 = vpop.xlane.xlu1 %597 }
 0x4bb   : > { %1934 = vrcp.f32 %v598_v54 }
 0x4bd   : > { %v1933_v55 = vpop.eup %1932 }
 0x4be   : > { %v601_v56 = vmul.f32 %v1933_v55, %v1929_v40  ;;  %v712_v57 = vpop.permute.xlu1 %711 }
 0x4bf   : > { %1793 = vmatmul.mubr.msk.bf16.vlgmr.msra.gmra.mrb[4].mxu0 %vm482_vm5, %v712_v57 }
 0x4c0   : > { %v603_v59 = vpack.c.bf16 %v601_v56, %v601_v56  ;;  %1804 = vmatprep.mubr.msk.bf16.mxu0 %vm1970_vm4, %v1969_v62 }
 0x4c2   : > { %1781 = vmatmul.mubr.msk.bf16.vlgmr.msra.gmra.mrb[8].mxu1 %vm580_vm7, %v603_v59  ;;  %v768_v4 = vpop.permute.xlu1 %767 }
 0x4c3   : > { %1785 = vmatpush3.bf16.msra.mxu1 %v655_v60  ;;  %1786 = vmatprep.mubr.msk.bf16.mxu1 %vm1970_vm4, %v1969_v62 }
 0x4c4   : > { %1796 = vmatprep.subr.bf16.mxu1 %v1969_v62 }
 0x4c5   : > { %v1935_v61 = vpop.eup %1934 }
 0x4c6   : > { %v602_v63 = vmul.f32 %v1935_v61, %v1931_v42 }
 0x4c8   : > { %v604_v0 = vpack.c.bf16 %v602_v63, %v602_v63 }
 0x4ca   : > { %1787 = vmatmul.mubr.msk.bf16.vlgmr.msra.gmra.mrb[12].mxu1 %vm580_vm7, %v604_v0 }
 0x4cb   : > { %1798 = vmatprep.mubr.msk.bf16.mxu1 %vm1970_vm4, %v1969_v62 }
 0x4cc   : > { %1797 = vmatpush3.bf16.xpose.msra.mxu1 %v778_v3 }
 0x4cd   : > { %1808 = vmatprep.subr.bf16.mxu1 %v1969_v62 }
 0x4d3   : > { %1799 = vmatmul.mubr.msk.bf16.vlgmr.msra.gmra.mrb[16].mxu1 %vm482_vm5, %v768_v4 }
 0x4d4   : > { %1810 = vmatprep.mubr.msk.bf16.mxu1 %vm1970_vm4, %v1969_v62 }
 0x592   : > { %v758_v5 = vpop.f32.mrb[4].mxu0 }
 0x593   : > { %v759_v6 = vadd.f32 %v758_v5, %v2114_v18  ;;  %v1794_v7 = vpop.f32.mrb[5].mxu0 }
 0x594   : > { %v761_v8 = vpop.f32.mrb[6].mxu0 }
 0x595   : > { %v645_v9 = vpop.f32.mrb[8].mxu1  ;;  %v1795_v10 = vpop.f32.mrb[7].mxu0  ;;  %v820_v11 = vsel %vm580_vm7, %v759_v6, -inf }
 0x596   : > { %v697_v12 = vpack.c.bf16 %v645_v9, %v645_v9  ;;  %821 = vmax.xlane.f32.xlu0 %v820_v11  ;;  %v1782_v13 = vpop.f32.mrb[9].mxu1 }
 0x597   : > { %v648_v14 = vpop.f32.mrb[10].mxu1 }
 0x598   : > { %700 = vst.msk [vmem:[#allocation3] sm:$0xf] %vm699_vm8, %v697_v12  ;;  %v1783_v15 = vpop.f32.mrb[11].mxu1 }
 0x59d   : > { %v691_v16 = vpop.f32.mrb[12].mxu1 }
 0x59e   : > { %v698_v17 = vpack.c.bf16 %v691_v16, %v691_v16  ;;  %v1788_v19 = vpop.f32.mrb[13].mxu1 }
 0x59f   : > { %v694_v20 = vpop.f32.mrb[14].mxu1 }
 0x5a0   : > { %701 = vst.msk [vmem:[#allocation3 + $0x4] sm:$0xf] %vm699_vm8, %v698_v17  ;;  %v1789_v21 = vpop.f32.mrb[15].mxu1 }
 0x5a6   : > { %v814_v22 = vpop.f32.mrb[16].mxu1 }
 0x5a7   : > { %v815_v23 = vadd.f32 %v814_v22, %v2114_v18  ;;  %v1800_v24 = vpop.f32.mrb[17].mxu1 }
 0x5a8   : > { %v817_v25 = vpop.f32.mrb[18].mxu1 }
 0x5a9   : > { %v1801_v26 = vpop.f32.mrb[19].mxu1  ;;  %v823_v27 = vsel %vm580_vm7, %v815_v23, -inf }
 0x5aa   : > { %824 = vmax.xlane.f32.xlu1 %v823_v27  ;;  %v1913_v27 = vld [vmem:[#allocation2 + $0xc] ss:$0 sps:$4 sm:$0xff]  }
 0x5bb   : > { %898 = vrot.lane.b32.xlu1 %v1909_v28, %s1974_s12  ;;  %v1224_v28 = vld [vmem:[#allocation2] sm:$0xf] }
 0x5bc   : > { %v1694_v29 = vcombine.low %v1224_v28, %v1224_v28 }
 0x5bf   : > { %977 = vrot.lane.b32.xlu1 %v1682_v30, %s1975_s13  ;;  %v1225_v30 = vld [vmem:[#allocation2 + $0x8] sm:$0xf] }
 0x5c0   : > { %v1697_v31 = vcombine.low %v1225_v30, %v1225_v30 }
 0x5c3   : > { %1033 = vrot.lane.b32.xlu1 %v1685_v32, %s1975_s13  ;;  %v1227_v32 = vmul.bf16 1048592000, %v1225_v30 }
 0x5c5   : > { %v1696_v33 = vcombine.low %v1227_v32, %v1227_v32 }
 0x5c7   : > { %1028 = vrot.lane.b32.xlu1 %v1684_v35, %s1976_s14 }
 0x623   : > { %v822_v36 = vpop.xlane.xlu0 %821 }
 0x624   : > { %v826_v37 = vsub.f32 %v759_v6, %v822_v36 }
 0x626   : > { %v828_v38 = vmul.f32 1.442695, %v826_v37 }
 0x628   : > { %1936 = vpow2.f32 %v828_v38 }
 0x632   : > { %v1937_v39 = vpop.eup %1936 }
 0x633   : > { %v832_v40 = vsel %vm580_vm7, %v1937_v39, 0.0 }
 0x634   : > { %833 = vadd.xlane.f32.xlu0 %v832_v40 }
 0x637   : > { %v825_v41 = vpop.xlane.xlu1 %824 }
 0x638   : > { %v827_v42 = vsub.f32 %v815_v23, %v825_v41 }
 0x63a   : > { %v830_v43 = vmul.f32 1.442695, %v827_v42 }
 0x63b   : > { %v899_v44 = vpop.permute.xlu1 %898 }
 0x63c   : > { %1938 = vpow2.f32 %v830_v43  ;;  %v904_v45 = vsel %vm460_vm1, %v899_v44, 0 }
 0x63d   : > { %1809 = vmatpush3.bf16.msra.mxu1 %v904_v45 }
 0x63e   : > { %1820 = vmatprep.subr.bf16.mxu1 %v1969_v62 }
 0x63f   : > { %v978_v57 = vpop.permute.xlu1 %977 }
 0x640   : > { %v983_v63 = vsel %vm482_vm5, %v978_v57, 0 }
 0x643   : > { %v1034_v61 = vpop.permute.xlu1 %1033 }
 0x644   : > { %v1039_v3 = vsel %vm482_vm5, %v1034_v61, 0 }
 0x646   : > { %v1939_v46 = vpop.eup %1938 }
 0x647   : > { %v835_v47 = vsel %vm580_vm7, %v1939_v46, 0.0  ;;  %v1029_v5 = vpop.permute.xlu1 %1028 }
 0x648   : > { %836 = vadd.xlane.f32.xlu0 %v835_v47  ;;  %v1916_v47 = vld [vmem:[#allocation2 + $0x4] ss:$0 sps:$4 sm:$0xff]  }
 0x65e   : > { %847 = vrot.lane.b32.xlu0 %v1912_v48, %s1974_s12  ;;  %v1226_v48 = vmul.bf16 1048592000, %v1224_v28  ;;  %v1917_v28 = vld [vmem:[#allocation2 + $0xc] ss:$0 sps:$4 sm:$0xff]  }
 0x660   : > { %v1693_v49 = vcombine.low %v1226_v48, %v1226_v48 }
 0x662   : > { %972 = vrot.lane.b32.xlu0 %v1681_v50, %s1976_s14 }
 0x6c1   : > { %v834_v51 = vpop.xlane.xlu0 %833 }
 0x6c2   : > { %1940 = vrcp.f32 %v834_v51 }
 0x6cc   : > { %v1941_v52 = vpop.eup %1940 }
 0x6cd   : > { %v840_v54 = vmul.f32 %v1941_v52, %v1937_v39 }
 0x6cf   : > { %v842_v58 = vpack.c.bf16 %v840_v54, %v840_v54 }
 0x6d5   : > { %v837_v53 = vpop.xlane.xlu0 %836 }
 0x6d6   : > { %1942 = vrcp.f32 %v837_v53 }
 0x6d9   : > { %v848_v55 = vpop.permute.xlu0 %847 }
 0x6da   : > { %v853_v56 = vsel %vm460_vm1, %v848_v55, 0 }
 0x6db   : > { %1803 = vmatpush3.bf16.msra.mxu0 %v853_v56 }
 0x6dc   : > { %1814 = vmatprep.subr.bf16.mxu0 %v1969_v62 }
 0x6dd   : > { %v973_v4 = vpop.permute.xlu0 %972 }
 0x6de   : > { %1805 = vmatmul.mubr.msk.bf16.vlgmr.msra.gmra.mrb[8].mxu0 %vm580_vm7, %v842_v58 }
 0x6df   : > { %1816 = vmatprep.mubr.msk.bf16.mxu0 %vm1970_vm4, %v1969_v62 }
 0x6e0   : > { %v1943_v59 = vpop.eup %1942 }
 0x6e1   : > { %v841_v60 = vmul.f32 %v1943_v59, %v1939_v46 }
 0x6e3   : > { %v843_v0 = vpack.c.bf16 %v841_v60, %v841_v60 }
 0x6e4   : > { %1815 = vmatpush3.bf16.xpose.msra.mxu0 %v983_v63 }
 0x6e5   : > { %1811 = vmatmul.mubr.msk.bf16.vlgmr.msra.gmra.mrb[20].mxu1 %vm580_vm7, %v843_v0  ;;  %1826 = vmatprep.subr.bf16.mxu0 %v1969_v62 }
 0x6e6   : > { %1821 = vmatpush3.bf16.xpose.msra.mxu1 %v1039_v3  ;;  %1822 = vmatprep.mubr.msk.bf16.mxu1 %vm1970_vm4, %v1969_v62 }
 0x6e7   : > { %1832 = vmatprep.subr.bf16.mxu1 %v1969_v62 }
 0x6eb   : > { %1817 = vmatmul.mubr.msk.bf16.vlgmr.msra.gmra.mrb[12].mxu0 %vm482_vm5, %v973_v4 }
 0x6ec   : > { %1828 = vmatprep.mubr.msk.bf16.mxu0 %vm1970_vm4, %v1969_v62 }
 0x6ed   : > { %1823 = vmatmul.mubr.msk.bf16.vlgmr.msra.gmra.mrb[24].mxu1 %vm482_vm5, %v1029_v5 }
 0x6ee   : > { %1834 = vmatprep.mubr.msk.bf16.mxu1 %vm1970_vm4, %v1969_v62 }
 0x7b1   : > { %v2176_v6 = vpop.f32.mrb[8].mxu0 }
 0x7b2   : > { %v1806_v7 = vpop.f32.mrb[9].mxu0 }
 0x7b3   : > { %v892_v8 = vpop.f32.mrb[10].mxu0 }
 0x7b4   : > { %v1807_v9 = vpop.f32.mrb[11].mxu0 }
 0x7b8   : > { %v2178_v10 = vpop.f32.mrb[20].mxu1 }
 0x7b9   : > { %v1812_v11 = vpop.f32.mrb[21].mxu1 }
 0x7ba   : > { %v943_v12 = vpop.f32.mrb[22].mxu1 }
 0x7bb   : > { %v1813_v13 = vpop.f32.mrb[23].mxu1 }
 0x7be   : > { %v1019_v14 = vpop.f32.mrb[12].mxu0 }
 0x7bf   : > { %v1020_v15 = vadd.f32 %v1019_v14, %v2114_v18  ;;  %v1818_v16 = vpop.f32.mrb[13].mxu0 }
 0x7c0   : > { %v1022_v17 = vpop.f32.mrb[14].mxu0  ;;  %v1075_v19 = vpop.f32.mrb[24].mxu1 }
 0x7c1   : > { %v1076_v20 = vadd.f32 %v1075_v19, %v2114_v18  ;;  %v1819_v21 = vpop.f32.mrb[15].mxu0  ;;  %v1824_v22 = vpop.f32.mrb[25].mxu1  ;;  %v1081_v23 = vsel %vm580_vm7, %v1020_v15, -inf }
 0x7c2   : > { %1082 = vmax.xlane.f32.xlu0 %v1081_v23  ;;  %v1078_v24 = vpop.f32.mrb[26].mxu1 }
 0x7c3   : > { %v1825_v25 = vpop.f32.mrb[27].mxu1  ;;  %v1084_v26 = vsel %vm580_vm7, %v1076_v20, -inf }
 0x7c4   : > { %1085 = vmax.xlane.f32.xlu1 %v1084_v26 }
 0x7d5   : > { %1159 = vrot.lane.b32.xlu1 %v1913_v27, %s1976_s14 }
 0x7d9   : > { %1238 = vrot.lane.b32.xlu1 %v1694_v29, %s1977_s15  ;;  %v1717_v29 = vpack.c.bf16 %v2176_v6, %v2176_v6 }
 0x7dd   : > { %1294 = vrot.lane.b32.xlu1 %v1697_v31, %s1977_s15 }
 0x7e1   : > { %1289 = vrot.lane.b32.xlu1 %v1696_v33, %s1978_s16 }
 0x84f   : > { %v1083_v35 = vpop.xlane.xlu0 %1082 }
 0x850   : > { %v1087_v36 = vsub.f32 %v1020_v15, %v1083_v35 }
 0x851   : > { %v1086_v37 = vpop.xlane.xlu1 %1085 }
 0x852   : > { %v1089_v38 = vmul.f32 1.442695, %v1087_v36  ;;  %v1088_v39 = vsub.f32 %v1076_v20, %v1086_v37 }
 0x854   : > { %1944 = vpow2.f32 %v1089_v38  ;;  %v1091_v40 = vmul.f32 1.442695, %v1088_v39 }
 0x855   : > { %v1160_v41 = vpop.permute.xlu1 %1159 }
 0x856   : > { %1946 = vpow2.f32 %v1091_v40  ;;  %v1165_v42 = vsel %vm460_vm1, %v1160_v41, 0 }
 0x857   : > { %1833 = vmatpush3.bf16.msra.mxu1 %v1165_v42 }
 0x858   : > { %1844 = vmatprep.subr.bf16.mxu1 %v1969_v62 }
 0x859   : > { %v1239_v55 = vpop.permute.xlu1 %1238 }
 0x85a   : > { %v1244_v61 = vsel %vm482_vm5, %v1239_v55, 0 }
 0x85d   : > { %v1295_v60 = vpop.permute.xlu1 %1294 }
 0x85e   : > { %v1945_v43 = vpop.eup %1944  ;;  %v1300_v0 = vsel %vm482_vm5, %v1295_v60, 0  ;;  %v1921_v60 = vld [vmem:[%s2274_s5 + $0x10] sm:$0xff]  }
 0x85f   : > { %v1093_v44 = vsel %vm580_vm7, %v1945_v43, 0.0 }
 0x860   : > { %v1947_v45 = vpop.eup %1946  ;;  %1094 = vadd.xlane.f32.xlu0 %v1093_v44 }
 0x861   : > { %v1096_v46 = vsel %vm580_vm7, %v1947_v45, 0.0  ;;  %v1290_v4 = vpop.permute.xlu1 %1289 }
 0x864   : > { %1097 = vadd.xlane.f32.xlu0 %v1096_v46 }
 0x87a   : > { %1108 = vrot.lane.b32.xlu0 %v1916_v47, %s1976_s14 }
 0x87e   : > { %1233 = vrot.lane.b32.xlu0 %v1693_v49, %s1978_s16 }
 0x8ed   : > { %v1095_v50 = vpop.xlane.xlu0 %1094 }
 0x8ee   : > { %1948 = vrcp.f32 %v1095_v50 }
 0x8f1   : > { %v1098_v51 = vpop.xlane.xlu0 %1097 }
 0x8f2   : > { %1950 = vrcp.f32 %v1098_v51 }
 0x8f5   : > { %v1109_v52 = vpop.permute.xlu0 %1108 }
 0x8f6   : > { %v1114_v53 = vsel %vm460_vm1, %v1109_v52, 0 }
 0x8f7   : > { %1827 = vmatpush3.bf16.msra.mxu0 %v1114_v53 }
 0x8f8   : > { %v1949_v54 = vpop.eup %1948  ;;  %1838 = vmatprep.subr.bf16.mxu0 %v1969_v62 }
 0x8f9   : > { %v1101_v56 = vmul.f32 %v1949_v54, %v1945_v43  ;;  %v1234_v3 = vpop.permute.xlu0 %1233 }
 0x8fb   : > { %v1103_v57 = vpack.c.bf16 %v1101_v56, %v1101_v56 }
 0x8fc   : > { %v1951_v58 = vpop.eup %1950 }
 0x8fd   : > { %v1102_v59 = vmul.f32 %v1951_v58, %v1947_v45  ;;  %1829 = vmatmul.mubr.msk.bf16.vlgmr.msra.gmra.mrb[16].mxu0 %vm580_vm7, %v1103_v57  ;;  %v1918_v45 = vld [vmem:[#allocation2 + $0x4] ss:$0 sps:$4 sm:$0xff]  }
 0x8fe   : > { %1840 = vmatprep.mubr.msk.bf16.mxu0 %vm1970_vm4, %v1969_v62  ;;  %v1919_v58 = vld [vmem:[%s2274_s5] sm:$0xff]  }
 0x8ff   : > { %v1104_v63 = vpack.c.bf16 %v1102_v59, %v1102_v59  ;;  %v1920_v59 = vld [vmem:[%s2274_s5 + $0x8] sm:$0xff]  }
 0x900   : > { %1839 = vmatpush3.bf16.xpose.msra.mxu0 %v1244_v61  ;;  %v1922_v61 = vld [vmem:[%s2274_s5 + $0x18] sm:$0xff]  }
 0x901   : > { %1835 = vmatmul.mubr.msk.bf16.vlgmr.msra.gmra.mrb[28].mxu1 %vm580_vm7, %v1104_v63  ;;  %1850 = vmatprep.subr.bf16.mxu0 %v1969_v62 }
 0x902   : > { %1845 = vmatpush3.bf16.xpose.msra.mxu1 %v1300_v0  ;;  %1846 = vmatprep.mubr.msk.bf16.mxu1 %vm1970_vm4, %v1969_v62 }
 0x903   : > { %1856 = vmatprep.subr.bf16.mxu1 %v1969_v62 }
 0x907   : > { %1841 = vmatmul.mubr.msk.bf16.vlgmr.msra.gmra.mrb[20].mxu0 %vm482_vm5, %v1234_v3 }
 0x908   : > { %1852 = vmatprep.mubr.msk.bf16.mxu0 %vm1970_vm4, %v1969_v62 }
 0x909   : > { %1847 = vmatmul.mubr.msk.bf16.vlgmr.msra.gmra.mrb[32].mxu1 %vm482_vm5, %v1290_v4 }
 0x90a   : > { %1858 = vmatprep.mubr.msk.bf16.mxu1 %vm1970_vm4, %v1969_v62 }
 0x9d0   : > { %v1150_v5 = vpop.f32.mrb[16].mxu0 }
 0x9d1   : > { %v1830_v7 = vpop.f32.mrb[17].mxu0  ;;  %v1719_v46 = vpack.c.bf16 %v1150_v5, %v1150_v5 }
 0x9d2   : > { %v1153_v8 = vpop.f32.mrb[18].mxu0 }
 0x9d3   : > { %v1831_v9 = vpop.f32.mrb[19].mxu0 }
 0x9d4   : > { %v1201_v11 = vpop.f32.mrb[28].mxu1 }
 0x9d5   : > { %v1836_v12 = vpop.f32.mrb[29].mxu1  ;;  %v1720_v30 = vpack.c.bf16 %v1201_v11, %v1201_v11 }
 0x9d6   : > { %v1204_v13 = vpop.f32.mrb[30].mxu1 }
 0x9d7   : > { %v1837_v14 = vpop.f32.mrb[31].mxu1 }
 0x9da   : > { %v1280_v15 = vpop.f32.mrb[20].mxu0 }
 0x9db   : > { %v1281_v16 = vadd.f32 %v1280_v15, %v2114_v18  ;;  %v1842_v17 = vpop.f32.mrb[21].mxu0  ;;  %v1495_v15 = vld [vmem:[%s2275_s6] sm:$0x1] }
 0x9dc   : > { %v1283_v19 = vpop.f32.mrb[22].mxu0  ;;  %v1336_v20 = vpop.f32.mrb[32].mxu1 }
 0x9dd   : > { %v1337_v21 = vadd.f32 %v1336_v20, %v2114_v18  ;;  %v1843_v22 = vpop.f32.mrb[23].mxu0  ;;  %v1848_v23 = vpop.f32.mrb[33].mxu1  ;;  %v1342_v24 = vsel %vm580_vm7, %v1281_v16, -inf  ;;  %v1718_v18 = vpack.c.bf16 %v2178_v10, %v2178_v10 }
 0x9de   : > { %1343 = vmax.xlane.f32.xlu0 %v1342_v24  ;;  %v1339_v25 = vpop.f32.mrb[34].mxu1 }
 0x9df   : > { %v1849_v26 = vpop.f32.mrb[35].mxu1  ;;  %v1345_v27 = vsel %vm580_vm7, %v1337_v21, -inf }
 0x9e0   : > { %1346 = vmax.xlane.f32.xlu1 %v1345_v27 }
 0x9f1   : > { %1420 = vrot.lane.b32.xlu1 %v1917_v28, %s1978_s16 }
 0x9f5   : > { %954 = vrot.lane.b32.xlu1 %v1717_v29, %s1977_s15 }
 0x9f9   : > { %956 = vrot.lane.b32.xlu1 %v1718_v18, %s1977_s15 }
 0x9fd   : > { %1217 = vrot.lane.b32.xlu1 %v1720_v30, %s1975_s13 }
 0xa6b   : > { %v1344_v31 = vpop.xlane.xlu0 %1343 }
 0xa6c   : > { %v1348_v32 = vsub.f32 %v1281_v16, %v1344_v31  ;;  %v1496_v16 = vunpack.c.l.bf16 %v1495_v15 }
 0xa6d   : > { %v1347_v33 = vpop.xlane.xlu1 %1346 }
 0xa6e   : > { %v1350_v35 = vmul.f32 1.442695, %v1348_v32  ;;  %v1349_v36 = vsub.f32 %v1337_v21, %v1347_v33  ;;  %v1500_v17 = vrot.slane %v1496_v16, %v2078_v34 }
 0xa70   : > { %1952 = vpow2.f32 %v1350_v35  ;;  %v1352_v37 = vmul.f32 1.442695, %v1349_v36 }
 0xa71   : > { %v1421_v38 = vpop.permute.xlu1 %1420 }
 0xa72   : > { %1954 = vpow2.f32 %v1352_v37  ;;  %v1426_v6 = vsel %vm460_vm1, %v1421_v38, 0 }
 0xa73   : > { %1857 = vmatpush3.bf16.msra.mxu1 %v1426_v6 }
 0xa75   : > { %v955_v39 = vpop.permute.xlu1 %954 }
 0xa76   : > { %961 = vst.msk [vmem:[#allocation3] sm:$0xf] %vm960_vm9, %v955_v39 }
 0xa79   : > { %v957_v10 = vpop.permute.xlu1 %956 }
 0xa7a   : > { %v1953_v40 = vpop.eup %1952  ;;  %962 = vst.msk [vmem:[#allocation3 + $0x4] sm:$0xf] %vm960_vm9, %v957_v10 }
 0xa7b   : > { %v1354_v41 = vsel %vm580_vm7, %v1953_v40, 0.0 }
 0xa7c   : > { %v1955_v42 = vpop.eup %1954  ;;  %1355 = vadd.xlane.f32.xlu0 %v1354_v41 }
 0xa7d   : > { %v1218_v43 = vpop.permute.xlu1 %1217  ;;  %v1357_v44 = vsel %vm580_vm7, %v1955_v42, 0.0 }
 0xa7e   : > { %1223 = vst.msk [vmem:[#allocation3 + $0x4] sm:$0xf] %vm1221_vm10, %v1218_v43 }
 0xa80   : > { %1358 = vadd.xlane.f32.xlu0 %v1357_v44 }
 0xa96   : > { %1369 = vrot.lane.b32.xlu0 %v1918_v45, %s1978_s16 }
 0xa9a   : > { %1215 = vrot.lane.b32.xlu0 %v1719_v46, %s1975_s13 }
 0xb09   : > { %v1356_v47 = vpop.xlane.xlu0 %1355 }
 0xb0a   : > { %1956 = vrcp.f32 %v1356_v47 }
 0xb0d   : > { %v1359_v48 = vpop.xlane.xlu0 %1358 }
 0xb0e   : > { %1958 = vrcp.f32 %v1359_v48 }
 0xb11   : > { %v1370_v49 = vpop.permute.xlu0 %1369 }
 0xb12   : > { %v1375_v50 = vsel %vm460_vm1, %v1370_v49, 0 }
 0xb13   : > { %1851 = vmatpush3.bf16.msra.mxu0 %v1375_v50 }
 0xb14   : > { %v1957_v51 = vpop.eup %1956  ;;  %1862 = vmatprep.subr.bf16.mxu0 %v1969_v62 }
 0xb15   : > { %v1362_v52 = vmul.f32 %v1957_v51, %v1953_v40  ;;  %v1216_v53 = vpop.permute.xlu0 %1215 }
 0xb16   : > { %1222 = vst.msk [vmem:[#allocation3] sm:$0xf] %vm1221_vm10, %v1216_v53 }
 0xb17   : > { %v1364_v54 = vpack.c.bf16 %v1362_v52, %v1362_v52 }
 0xb18   : > { %v1959_v55 = vpop.eup %1958 }
 0xb19   : > { %v1363_v56 = vmul.f32 %v1959_v55, %v1955_v42  ;;  %1853 = vmatmul.mubr.msk.bf16.vlgmr.msra.gmra.mrb[24].mxu0 %vm580_vm7, %v1364_v54 }
 0xb1a   : > { %1870 = vmatprep.mubr.msk.bf16.mxu0 %vm1970_vm4, %v1969_v62  ;;  %1863 = vmatpush3.bf16.msra.mxu0 %v1919_v58 }
 0xb1b   : > { %v1365_v57 = vpack.c.bf16 %v1363_v56, %v1363_v56  ;;  %1864 = vmatprep.subr.bf16.mxu0 %v1969_v62 }
 0xb1d   : > { %1859 = vmatmul.mubr.msk.bf16.vlgmr.msra.gmra.mrb[36].mxu1 %vm580_vm7, %v1365_v57 }
 0xb1e   : > { %1865 = vmatpush3.bf16.msra.mxu0 %v1920_v59 }
 0xb1f   : > { %1866 = vmatprep.subr.bf16.mxu0 %v1969_v62 }
 0xb22   : > { %1867 = vmatpush3.bf16.msra.mxu0 %v1921_v60 }
 0xb23   : > { %1868 = vmatprep.subr.bf16.mxu0 %v1969_v62 }
 0xb26   : > { %1869 = vmatpush3.bf16.msra.mxu0 %v1922_v61 }
 0xbec   : > { %v1411_v63 = vpop.f32.mrb[24].mxu0 }
 0xbed   : > { %v1721_v0 = vpack.c.bf16 %v1411_v63, %v1411_v63  ;;  %v1854_v3 = vpop.f32.mrb[25].mxu0 }
 0xbee   : > { %v1414_v4 = vpop.f32.mrb[26].mxu0 }
 0xbef   : > { %1476 = vrot.lane.b32.xlu0 %v1721_v0, %s1973_s11  ;;  %v1855_v5 = vpop.f32.mrb[27].mxu0 }
 0xbf0   : > { %v1462_v7 = vpop.f32.mrb[36].mxu1 }
 0xbf1   : > { %v1722_v8 = vpack.c.bf16 %v1462_v7, %v1462_v7  ;;  %v1860_v9 = vpop.f32.mrb[37].mxu1 }
 0xbf2   : > { %v1465_v11 = vpop.f32.mrb[38].mxu1 }
 0xbf3   : > { %1478 = vrot.lane.b32.xlu1 %v1722_v8, %s1973_s11  ;;  %v1861_v12 = vpop.f32.mrb[39].mxu1 }
 0xc61   : > { %v1477_v13 = vpop.permute.xlu0 %1476 }
 0xc62   : > { %1483 = vst.msk [vmem:[#allocation3] sm:$0xf] %vm1482_vm11, %v1477_v13 }
 0xc65   : > { %v1479_v62 = vpop.permute.xlu1 %1478 }
 0xc66   : > { %1484 = vst.msk [vmem:[#allocation3 + $0x4] sm:$0xf] %vm1482_vm11, %v1479_v62 }
 0xc6d   : > { %v1923_v14 = vld [vmem:[#allocation3] sm:$0xff]  }
 0xc6e   : > { %1871 = vmatmul.mubr.msk.bf16.vlgmr.msra.gmra.mrb[28].mxu0 %vm288_vm0, %v1923_v14 }
 0xd41   : > { %v1567_v19 = vpop.f32.mrb[28].mxu0 }
 0xd42   : > { %v1568_v20 = vadd.f32 %v1567_v19, %v1500_v17  ;;  %v1872_v21 = vpop.f32.mrb[29].mxu0 }
 0xd43   : > { %v1570_v22 = vpop.f32.mrb[30].mxu0 }
 0xd44   : > { %v1574_v23 = vadd.f32 %v2035_v1, %v1568_v20  ;;  %v1571_v24 = vadd.f32 %v1570_v22, %v1500_v17  ;;  %v1873_v25 = vpop.f32.mrb[31].mxu0 }
 0xd46   : > { %v1723_v26 = vpack.c.bf16 %v1574_v23, %v1574_v23  ;;  %v1575_v27 = vadd.f32 %v2037_v2, %v1571_v24 }
 0xd48   : > { %1585 = vst.msk [vmem:[%s280_s9] sm:$0xf] %vm1584_vm12, %v1723_v26  ;;  %v1724_v28 = vpack.c.bf16 %v1575_v27, %v1575_v27 }
 0xd4a   : > { %1586 = vst.msk [vmem:[%s280_s9 + $0x4] sm:$0xf] %vm1584_vm12, %v1724_v28 }
 0xd4b PF: > { %s17_s24 = sadd.s32 1, %s1966_s24  }
 0xd4c   : > { %p14_p4 = scmp.ge.s32.totalorder %s17_s24, 4  }
 0xd4e   :  { %16 = sbr.rel (!%p14_p4) target bundleno = 1 (0x1), region = 78 }

</bundles_post_ra>
